<compile_context>
chip_gen: v7x
topology: tpu7x:2x2x1
jax: 0.10.0
libtpu: 0.0.40
codegen_flags: <defaults>
</compile_context>

<pallas_src>
import math

import jax
import jax.numpy as jnp
import numpy as np
from jax import lax
from jax.experimental import pallas as pl
from jax.experimental.pallas import tpu as pltpu


def _softplus(x):
    # numerically stable softplus (matches torch.nn.functional.softplus)
    safe = jnp.where(x > 20.0, 0.0, x)
    return jnp.where(x > 20.0, x, jnp.log1p(jnp.exp(safe)))


# ----------------------------------------------------------------------------
# Kernel: one (batch, seq-chunk) tile of the SSM forward.
# ----------------------------------------------------------------------------
def ssm_kernel(
    x_ref,        # [1, Lc, d_inner]  f32
    w_xproj_ref,  # [d_inner, d_delta + 2*d_state]  bf16
    w_dt_ref,     # [d_delta, d_inner]              bf16
    b_dt_ref,     # [1, d_inner]                    f32
    a_log_t_ref,  # [d_state, d_inner]              f32   (A_log transposed, lane-dense)
    d_ref,        # [1, d_inner]                    f32
    out_ref,      # [1, Lc, d_inner]                f32
    abar_ref,     # scratch VMEM [Lc, d_state, d_inner]
    bx_ref,       # scratch VMEM [Lc, d_state, d_inner]
    cb_ref,       # scratch VMEM [Lc, d_state, d_inner]
    h_ref,        # scratch VMEM [d_state, d_inner]   (carried across chunks)
    y_ref,        # scratch VMEM [Lc, d_inner]
):
    Lc = x_ref.shape[1]
    d_inner = x_ref.shape[2]
    d_delta = w_dt_ref.shape[0]
    d_state = a_log_t_ref.shape[0]

    # Reset the carried hidden state at the start of each sequence.
    @pl.when(pl.program_id(1) == 0)
    def _():
        h_ref[...] = jnp.zeros_like(h_ref)

    x = x_ref[0]                                                    # [Lc, d_inner] f32

    # ---- x_proj -> (delta_in, B, C)   (bf16 MXU, f32 accumulation) ----------
    xproj = jnp.dot(x.astype(jnp.bfloat16), w_xproj_ref[...],
                    preferred_element_type=jnp.float32)             # [Lc, d_delta+2*d_state]
    delta_in = xproj[:, :d_delta]
    Bm = xproj[:, d_delta:d_delta + d_state]                        # [Lc, d_state]
    Cm = xproj[:, d_delta + d_state:]                               # [Lc, d_state]

    # ---- dt_proj + softplus --------------------------------------------------
    delta = _softplus(
        jnp.dot(delta_in.astype(jnp.bfloat16), w_dt_ref[...],
                preferred_element_type=jnp.float32)
        + b_dt_ref[...])                                            # [Lc, d_inner] f32

    # ---- discretization, lane-dense on d_inner -------------------------------
    A_t = -jnp.exp(a_log_t_ref[...])                                # [d_state, d_inner]
    abar_ref[...] = jnp.exp(delta[:, None, :] * A_t[None, :, :])    # [Lc, d_state, d_inner]
    dx = delta * x                                                  # [Lc, d_inner]
    bx_ref[...] = dx[:, None, :] * Bm[:, :, None]                   # [Lc, d_state, d_inner]
    cb_ref[...] = jnp.broadcast_to(Cm[:, :, None], (Lc, d_state, d_inner))

    # ---- sequential selective scan, C-contraction fused ----------------------
    unroll = 8 if Lc % 8 == 0 else (4 if Lc % 4 == 0 else 1)

    def scan_body(t, h):
        h = abar_ref[t] * h + bx_ref[t]                             # [d_state, d_inner]
        y_ref[pl.ds(t, 1)] = jnp.sum(cb_ref[t] * h, axis=0, keepdims=True)
        return h

    h_final = lax.fori_loop(0, Lc, scan_body, h_ref[...], unroll=unroll)
    h_ref[...] = h_final                                            # carry to next chunk

    # ---- skip connection ------------------------------------------------------
    out_ref[0] = (y_ref[...] + d_ref[...] * x).astype(out_ref.dtype)


# ----------------------------------------------------------------------------
# Wrapper
# ----------------------------------------------------------------------------
def _choose_chunk(L, d_inner, d_state, target=256, budget_bytes=40 << 20):
    """Largest seq chunk <= target that divides L, is sublane-aligned, and keeps
    the per-chunk f32 scratch (3 state buffers + y) under budget."""
    per_row = (3 * d_state * d_inner + d_inner) * 4
    cap = max(8, budget_bytes // per_row)
    best = L
    for lc in range(8, L + 1, 8):
        if L % lc == 0 and lc <= min(target, cap):
            best = lc
    return best


def ssm_forward(x, params, *, d_state, d_delta, chunk=None):
    B, L, d_inner = x.shape
    Lc = _choose_chunk(L, d_inner, d_state) if chunk is None else chunk
    assert L % Lc == 0
    n_chunks = L // Lc

    # host-side layout / dtype prep
    w_xproj = params["w_xproj"].astype(jnp.bfloat16)       # [d_inner, d_delta+2*d_state]
    w_dt = params["w_dt"].astype(jnp.bfloat16)             # [d_delta, d_inner]
    b_dt = params["b_dt"].reshape(1, d_inner).astype(jnp.float32)
    a_log_t = params["a_log"].T.astype(jnp.float32)        # [d_state, d_inner] lane-dense
    d_param = params["D"].reshape(1, d_inner).astype(jnp.float32)

    def full(arr):
        nd = arr.ndim
        return pl.BlockSpec(arr.shape, lambda b, c, _nd=nd: (0,) * _nd)

    return pl.pallas_call(
        ssm_kernel,
        out_shape=jax.ShapeDtypeStruct((B, L, d_inner), jnp.float32),
        grid_spec=pltpu.PrefetchScalarGridSpec(
            num_scalar_prefetch=0,
            grid=(B, n_chunks),
            in_specs=[
                pl.BlockSpec((1, Lc, d_inner), lambda b, c: (b, c, 0)),
                full(w_xproj),
                full(w_dt),
                full(b_dt),
                full(a_log_t),
                full(d_param),
            ],
            out_specs=pl.BlockSpec((1, Lc, d_inner), lambda b, c: (b, c, 0)),
            scratch_shapes=[
                pltpu.VMEM((Lc, d_state, d_inner), jnp.float32),   # abar
                pltpu.VMEM((Lc, d_state, d_inner), jnp.float32),   # delta*B*x
                pltpu.VMEM((Lc, d_state, d_inner), jnp.float32),   # C broadcast
                pltpu.VMEM((d_state, d_inner), jnp.float32),       # carried h
                pltpu.VMEM((Lc, d_inner), jnp.float32),            # y
            ],
        ),
        compiler_params=pltpu.CompilerParams(
            dimension_semantics=("parallel", "arbitrary"),
            vmem_limit_bytes=64 * 1024 * 1024),
    )(x, w_xproj, w_dt, b_dt, a_log_t, d_param)


# ----------------------------------------------------------------------------
# Pure-JAX reference (mirrors SSM.forward) for validation.
# ----------------------------------------------------------------------------
def ssm_ref(x, p, *, d_state, d_delta):
    B, L, d_inner = x.shape
    xproj = x @ p["w_xproj"]
    delta_in = xproj[..., :d_delta]
    Bm = xproj[..., d_delta:d_delta + d_state]
    Cm = xproj[..., d_delta + d_state:]
    delta = jax.nn.softplus(delta_in @ p["w_dt"] + p["b_dt"])
    A = -jnp.exp(p["a_log"])                                    # [d_inner, d_state]
    abar = jnp.exp(delta[..., None] * A[None, None])            # [B,L,d_inner,d_state]
    bx = delta[..., None] * Bm[:, :, None, :] * x[..., None]

    def step(h, inp):
        a_t, bx_t = inp
        h = a_t * h + bx_t
        return h, h

    h0 = jnp.zeros((B, d_inner, d_state), jnp.float32)
    _, hs = lax.scan(step, h0, (abar.transpose(1, 0, 2, 3),
                                bx.transpose(1, 0, 2, 3)))
    hs = hs.transpose(1, 0, 2, 3)
    y = jnp.sum(hs * Cm[:, :, None, :], axis=-1)
    return y + p["D"] * x


# ----------------------------------------------------------------------------
# Deterministic parameter construction (shapes / init from SSM.__init__).
# ----------------------------------------------------------------------------
def make_params(key, d_model, d_state, d_delta,
                dt_min=0.001, dt_max=0.1, dt_scale=1.0, dt_init_floor=1e-4):
    d_inner = 2 * d_model
    k1, k2, k3 = jax.random.split(key, 3)
    u = lambda k, shape, lim: jax.random.uniform(
        k, shape, jnp.float32, minval=-lim, maxval=lim)

    w_xproj = u(k1, (d_inner, d_delta + 2 * d_state), 1.0 / math.sqrt(d_inner))
    dt_init_std = d_delta ** (-0.5) * dt_scale
    w_dt = u(k2, (d_delta, d_inner), dt_init_std)
    dt = jnp.exp(jax.random.uniform(k3, (d_inner,), jnp.float32)
                 * (math.log(dt_max) - math.log(dt_min)) + math.log(dt_min))
    dt = jnp.maximum(dt, dt_init_floor)
    b_dt = dt + jnp.log(-jnp.expm1(-dt))
    a_log = jnp.log(jnp.tile(
        jnp.arange(1, d_state + 1, dtype=jnp.float32)[None, :], (d_inner, 1)))
    D = jnp.ones((d_inner,), jnp.float32)
    return dict(w_xproj=w_xproj, w_dt=w_dt, b_dt=b_dt, a_log=a_log, D=D)


if __name__ == "__main__":
    # Config: d_model=16 -> d_inner=32, d_state=16, d_delta=8
    B, L, d_model = 2, 8, 16
    d_state, d_delta = 16, 8
    d_inner = 2 * d_model

    key = jax.random.PRNGKey(0)
    pkey, xkey = jax.random.split(key)
    params = make_params(pkey, d_model, d_state, d_delta)
    x = jax.random.normal(xkey, (B, L, d_inner), jnp.float32)

    out = ssm_forward(x, params, d_state=d_state, d_delta=d_delta)
    out = jax.block_until_ready(out)

    ref = ssm_ref(x, params, d_state=d_state, d_delta=d_delta)
    np.testing.assert_allclose(np.asarray(out), np.asarray(ref),
                               rtol=2e-2, atol=2e-3)
    print("KERNEL_OK")
</pallas_src>

<mosaic_0001>
module attributes {stable_mosaic.version = 11 : i64} {
  func.func @ssm_kernel(%arg0: i32, %arg1: i32, %arg2: memref<1x8x32xf32, #tpu.memory_space<vmem>>, %arg3: memref<32x40xbf16, #tpu.memory_space<vmem>>, %arg4: memref<8x32xbf16, #tpu.memory_space<vmem>>, %arg5: memref<1x32xf32, #tpu.memory_space<vmem>>, %arg6: memref<16x32xf32, #tpu.memory_space<vmem>>, %arg7: memref<1x32xf32, #tpu.memory_space<vmem>>, %arg8: memref<1x8x32xf32, #tpu.memory_space<vmem>>, %arg9: memref<8x16x32xf32, #tpu.memory_space<vmem>>, %arg10: memref<8x16x32xf32, #tpu.memory_space<vmem>>, %arg11: memref<8x16x32xf32, #tpu.memory_space<vmem>>, %arg12: memref<16x32xf32, #tpu.memory_space<vmem>>, %arg13: memref<8x32xf32, #tpu.memory_space<vmem>>) attributes {dimension_semantics = [#tpu.dimension_semantics<parallel>, #tpu.dimension_semantics<arbitrary>], iteration_bounds = array<i64: 2, 1>, scalar_prefetch = 0 : i64, scratch_operands = 5 : i64, tpu.core_type = #tpu.core_type<tc>, window_params = [{transform_indices = @transform_0, window_bounds = array<i64: 1, 8, 32>}, {pipeline_mode = #tpu.pipeline_mode<synchronous>, transform_indices = @transform_1, window_bounds = array<i64: 32, 40>}, {pipeline_mode = #tpu.pipeline_mode<synchronous>, transform_indices = @transform_2, window_bounds = array<i64: 8, 32>}, {pipeline_mode = #tpu.pipeline_mode<synchronous>, transform_indices = @transform_3, window_bounds = array<i64: 1, 32>}, {pipeline_mode = #tpu.pipeline_mode<synchronous>, transform_indices = @transform_4, window_bounds = array<i64: 16, 32>}, {pipeline_mode = #tpu.pipeline_mode<synchronous>, transform_indices = @transform_5, window_bounds = array<i64: 1, 32>}, {transform_indices = @transform_6, window_bounds = array<i64: 1, 8, 32>}]} {
    %c0_i32 = arith.constant 0 : i32
    %0 = arith.cmpi eq, %arg1, %c0_i32 : i32
    %1 = arith.extui %0 : i1 to i32
    %c0_i32_0 = arith.constant 0 : i32
    %2 = arith.cmpi ne, %1, %c0_i32_0 : i32
    scf.if %2 {
      %cst_101 = arith.constant 0.000000e+00 : f32
      %186 = vector.broadcast %cst_101 : f32 to vector<16x32xf32>
      %c0_102 = arith.constant 0 : index
      %c0_103 = arith.constant 0 : index
      %187 = vector.load %arg12[%c0_102, %c0_103] : memref<16x32xf32, #tpu.memory_space<vmem>>, vector<16x32xf32>
      tpu.vector_store %arg12[%c0_102, %c0_103], %186 {strides = array<i32>} : memref<16x32xf32, #tpu.memory_space<vmem>>, vector<16x32xf32>,
    } else {
    }
    %c0 = arith.constant 0 : index
    %c0_1 = arith.constant 0 : index
    %c0_2 = arith.constant 0 : index
    %3 = vector.load %arg2[%c0, %c0_1, %c0_2] : memref<1x8x32xf32, #tpu.memory_space<vmem>>, vector<1x8x32xf32>
    %4 = vector.shape_cast %3 : vector<1x8x32xf32> to vector<8x32xf32>
    %5 = arith.truncf %4 : vector<8x32xf32> to vector<8x32xbf16>
    %c0_3 = arith.constant 0 : index
    %c0_4 = arith.constant 0 : index
    %6 = vector.load %arg3[%c0_3, %c0_4] : memref<32x40xbf16, #tpu.memory_space<vmem>>, vector<32x40xbf16>
    %cst = arith.constant dense<0.000000e+00> : vector<8x40xf32>
    %7 = tpu.matmul %5, %6, %cst {dimension_numbers = #tpu.dot_dimension_numbers<[1], [0], [0], [1], [0, 0, 1, 1], [], []>} : vector<8x32xbf16>, vector<32x40xbf16>, vector<8x40xf32> -> vector<8x40xf32>
    %8 = vector.extract_strided_slice %7 {offsets = [0, 0], sizes = [8, 8], strides = [1, 1]} : vector<8x40xf32> to vector<8x8xf32>
    %9 = vector.extract_strided_slice %7 {offsets = [0, 8], sizes = [8, 16], strides = [1, 1]} : vector<8x40xf32> to vector<8x16xf32>
    %10 = vector.extract_strided_slice %7 {offsets = [0, 24], sizes = [8, 16], strides = [1, 1]} : vector<8x40xf32> to vector<8x16xf32>
    %11 = arith.truncf %8 : vector<8x8xf32> to vector<8x8xbf16>
    %c0_5 = arith.constant 0 : index
    %c0_6 = arith.constant 0 : index
    %12 = vector.load %arg4[%c0_5, %c0_6] : memref<8x32xbf16, #tpu.memory_space<vmem>>, vector<8x32xbf16>
    %cst_7 = arith.constant dense<0.000000e+00> : vector<8x32xf32>
    %13 = tpu.matmul %11, %12, %cst_7 {dimension_numbers = #tpu.dot_dimension_numbers<[1], [0], [0], [1], [0, 0, 1, 1], [], []>} : vector<8x8xbf16>, vector<8x32xbf16>, vector<8x32xf32> -> vector<8x32xf32>
    %c0_8 = arith.constant 0 : index
    %c0_9 = arith.constant 0 : index
    %14 = vector.load %arg5[%c0_8, %c0_9] : memref<1x32xf32, #tpu.memory_space<vmem>>, vector<1x32xf32>
    %15 = vector.broadcast %14 : vector<1x32xf32> to vector<8x32xf32>
    %16 = arith.addf %13, %15 : vector<8x32xf32>
    %cst_10 = arith.constant 2.000000e+01 : f32
    %17 = vector.broadcast %cst_10 : f32 to vector<8x32xf32>
    %18 = arith.cmpf ogt, %16, %17 : vector<8x32xf32>
    %cst_11 = arith.constant 0.000000e+00 : f32
    %19 = vector.broadcast %cst_11 : f32 to vector<8x32xf32>
    %20 = arith.select %18, %19, %16 : vector<8x32xi1>, vector<8x32xf32>
    %cst_12 = arith.constant 2.000000e+01 : f32
    %21 = vector.broadcast %cst_12 : f32 to vector<8x32xf32>
    %22 = arith.cmpf ogt, %16, %21 : vector<8x32xf32>
    %23 = math.exp %20 : vector<8x32xf32>
    %24 = math.log1p %23 : vector<8x32xf32>
    %25 = arith.select %22, %16, %24 : vector<8x32xi1>, vector<8x32xf32>
    %c0_13 = arith.constant 0 : index
    %c0_14 = arith.constant 0 : index
    %26 = vector.load %arg6[%c0_13, %c0_14] : memref<16x32xf32, #tpu.memory_space<vmem>>, vector<16x32xf32>
    %27 = math.exp %26 : vector<16x32xf32>
    %cst_15 = arith.constant 0.000000e+00 : f32
    %28 = vector.broadcast %cst_15 : f32 to vector<16x32xf32>
    %29 = arith.subf %28, %27 : vector<16x32xf32>
    %30 = vector.shape_cast %25 : vector<8x32xf32> to vector<8x1x32xf32>
    %31 = vector.shape_cast %29 : vector<16x32xf32> to vector<1x16x32xf32>
    %32 = vector.broadcast %30 : vector<8x1x32xf32> to vector<8x16x32xf32>
    %33 = vector.broadcast %31 : vector<1x16x32xf32> to vector<8x16x32xf32>
    %34 = arith.mulf %32, %33 : vector<8x16x32xf32>
    %35 = math.exp %34 : vector<8x16x32xf32>
    %c0_16 = arith.constant 0 : index
    %c0_17 = arith.constant 0 : index
    %c0_18 = arith.constant 0 : index
    %36 = vector.load %arg9[%c0_16, %c0_17, %c0_18] : memref<8x16x32xf32, #tpu.memory_space<vmem>>, vector<8x16x32xf32>
    tpu.vector_store %arg9[%c0_16, %c0_17, %c0_18], %35 {strides = array<i32>} : memref<8x16x32xf32, #tpu.memory_space<vmem>>, vector<8x16x32xf32>,
    %37 = arith.mulf %25, %4 : vector<8x32xf32>
    %38 = vector.shape_cast %37 : vector<8x32xf32> to vector<8x1x32xf32>
    %39 = vector.shape_cast %9 : vector<8x16xf32> to vector<8x16x1xf32>
    %40 = vector.broadcast %38 : vector<8x1x32xf32> to vector<8x16x32xf32>
    %41 = vector.broadcast %39 : vector<8x16x1xf32> to vector<8x16x32xf32>
    %42 = arith.mulf %40, %41 : vector<8x16x32xf32>
    %c0_19 = arith.constant 0 : index
    %c0_20 = arith.constant 0 : index
    %c0_21 = arith.constant 0 : index
    %43 = vector.load %arg10[%c0_19, %c0_20, %c0_21] : memref<8x16x32xf32, #tpu.memory_space<vmem>>, vector<8x16x32xf32>
    tpu.vector_store %arg10[%c0_19, %c0_20, %c0_21], %42 {strides = array<i32>} : memref<8x16x32xf32, #tpu.memory_space<vmem>>, vector<8x16x32xf32>,
    %44 = vector.shape_cast %10 : vector<8x16xf32> to vector<8x16x1xf32>
    %45 = vector.shape_cast %44 : vector<8x16x1xf32> to vector<8x16x1xf32>
    %46 = vector.broadcast %45 : vector<8x16x1xf32> to vector<8x16x32xf32>
    %c0_22 = arith.constant 0 : index
    %c0_23 = arith.constant 0 : index
    %c0_24 = arith.constant 0 : index
    %47 = vector.load %arg11[%c0_22, %c0_23, %c0_24] : memref<8x16x32xf32, #tpu.memory_space<vmem>>, vector<8x16x32xf32>
    tpu.vector_store %arg11[%c0_22, %c0_23, %c0_24], %46 {strides = array<i32>} : memref<8x16x32xf32, #tpu.memory_space<vmem>>, vector<8x16x32xf32>,
    %c0_25 = arith.constant 0 : index
    %c0_26 = arith.constant 0 : index
    %48 = vector.load %arg12[%c0_25, %c0_26] : memref<16x32xf32, #tpu.memory_space<vmem>>, vector<16x32xf32>
    %c0_i32_27 = arith.constant 0 : i32
    %49 = arith.index_cast %c0_i32_27 : i32 to index
    %c0_28 = arith.constant 0 : index
    %c0_29 = arith.constant 0 : index
    %50 = vector.load %arg9[%49, %c0_28, %c0_29] : memref<8x16x32xf32, #tpu.memory_space<vmem>>, vector<1x16x32xf32>
    %51 = vector.shape_cast %50 : vector<1x16x32xf32> to vector<16x32xf32>
    %52 = arith.mulf %51, %48 : vector<16x32xf32>
    %53 = arith.index_cast %c0_i32_27 : i32 to index
    %c0_30 = arith.constant 0 : index
    %c0_31 = arith.constant 0 : index
    %54 = vector.load %arg10[%53, %c0_30, %c0_31] : memref<8x16x32xf32, #tpu.memory_space<vmem>>, vector<1x16x32xf32>
    %55 = vector.shape_cast %54 : vector<1x16x32xf32> to vector<16x32xf32>
    %56 = arith.addf %52, %55 : vector<16x32xf32>
    %57 = arith.index_cast %c0_i32_27 : i32 to index
    %c0_32 = arith.constant 0 : index
    %c0_33 = arith.constant 0 : index
    %58 = vector.load %arg11[%57, %c0_32, %c0_33] : memref<8x16x32xf32, #tpu.memory_space<vmem>>, vector<1x16x32xf32>
    %59 = vector.shape_cast %58 : vector<1x16x32xf32> to vector<16x32xf32>
    %60 = arith.mulf %59, %56 : vector<16x32xf32>
    %cst_34 = arith.constant dense<0.000000e+00> : vector<32xf32>
    %61 = vector.multi_reduction <add>, %60, %cst_34 [0] : vector<16x32xf32> to vector<32xf32>
    %62 = vector.shape_cast %61 : vector<32xf32> to vector<1x32xf32>
    %63 = arith.index_cast %c0_i32_27 : i32 to index
    %c0_35 = arith.constant 0 : index
    %64 = vector.load %arg13[%63, %c0_35] : memref<8x32xf32, #tpu.memory_space<vmem>>, vector<1x32xf32>
    tpu.vector_store %arg13[%63, %c0_35], %62 {strides = array<i32>} : memref<8x32xf32, #tpu.memory_space<vmem>>, vector<1x32xf32>,
    %c1_i32 = arith.constant 1 : i32
    %65 = arith.index_cast %c1_i32 : i32 to index
    %c0_36 = arith.constant 0 : index
    %c0_37 = arith.constant 0 : index
    %66 = vector.load %arg9[%65, %c0_36, %c0_37] : memref<8x16x32xf32, #tpu.memory_space<vmem>>, vector<1x16x32xf32>
    %67 = vector.shape_cast %66 : vector<1x16x32xf32> to vector<16x32xf32>
    %68 = arith.mulf %67, %56 : vector<16x32xf32>
    %69 = arith.index_cast %c1_i32 : i32 to index
    %c0_38 = arith.constant 0 : index
    %c0_39 = arith.constant 0 : index
    %70 = vector.load %arg10[%69, %c0_38, %c0_39] : memref<8x16x32xf32, #tpu.memory_space<vmem>>, vector<1x16x32xf32>
    %71 = vector.shape_cast %70 : vector<1x16x32xf32> to vector<16x32xf32>
    %72 = arith.addf %68, %71 : vector<16x32xf32>
    %73 = arith.index_cast %c1_i32 : i32 to index
    %c0_40 = arith.constant 0 : index
    %c0_41 = arith.constant 0 : index
    %74 = vector.load %arg11[%73, %c0_40, %c0_41] : memref<8x16x32xf32, #tpu.memory_space<vmem>>, vector<1x16x32xf32>
    %75 = vector.shape_cast %74 : vector<1x16x32xf32> to vector<16x32xf32>
    %76 = arith.mulf %75, %72 : vector<16x32xf32>
    %cst_42 = arith.constant dense<0.000000e+00> : vector<32xf32>
    %77 = vector.multi_reduction <add>, %76, %cst_42 [0] : vector<16x32xf32> to vector<32xf32>
    %78 = vector.shape_cast %77 : vector<32xf32> to vector<1x32xf32>
    %79 = arith.index_cast %c1_i32 : i32 to index
    %c0_43 = arith.constant 0 : index
    %80 = vector.load %arg13[%79, %c0_43] : memref<8x32xf32, #tpu.memory_space<vmem>>, vector<1x32xf32>
    tpu.vector_store %arg13[%79, %c0_43], %78 {strides = array<i32>} : memref<8x32xf32, #tpu.memory_space<vmem>>, vector<1x32xf32>,
    %c2_i32 = arith.constant 2 : i32
    %81 = arith.index_cast %c2_i32 : i32 to index
    %c0_44 = arith.constant 0 : index
    %c0_45 = arith.constant 0 : index
    %82 = vector.load %arg9[%81, %c0_44, %c0_45] : memref<8x16x32xf32, #tpu.memory_space<vmem>>, vector<1x16x32xf32>
    %83 = vector.shape_cast %82 : vector<1x16x32xf32> to vector<16x32xf32>
    %84 = arith.mulf %83, %72 : vector<16x32xf32>
    %85 = arith.index_cast %c2_i32 : i32 to index
    %c0_46 = arith.constant 0 : index
    %c0_47 = arith.constant 0 : index
    %86 = vector.load %arg10[%85, %c0_46, %c0_47] : memref<8x16x32xf32, #tpu.memory_space<vmem>>, vector<1x16x32xf32>
    %87 = vector.shape_cast %86 : vector<1x16x32xf32> to vector<16x32xf32>
    %88 = arith.addf %84, %87 : vector<16x32xf32>
    %89 = arith.index_cast %c2_i32 : i32 to index
    %c0_48 = arith.constant 0 : index
    %c0_49 = arith.constant 0 : index
    %90 = vector.load %arg11[%89, %c0_48, %c0_49] : memref<8x16x32xf32, #tpu.memory_space<vmem>>, vector<1x16x32xf32>
    %91 = vector.shape_cast %90 : vector<1x16x32xf32> to vector<16x32xf32>
    %92 = arith.mulf %91, %88 : vector<16x32xf32>
    %cst_50 = arith.constant dense<0.000000e+00> : vector<32xf32>
    %93 = vector.multi_reduction <add>, %92, %cst_50 [0] : vector<16x32xf32> to vector<32xf32>
    %94 = vector.shape_cast %93 : vector<32xf32> to vector<1x32xf32>
    %95 = arith.index_cast %c2_i32 : i32 to index
    %c0_51 = arith.constant 0 : index
    %96 = vector.load %arg13[%95, %c0_51] : memref<8x32xf32, #tpu.memory_space<vmem>>, vector<1x32xf32>
    tpu.vector_store %arg13[%95, %c0_51], %94 {strides = array<i32>} : memref<8x32xf32, #tpu.memory_space<vmem>>, vector<1x32xf32>,
    %c3_i32 = arith.constant 3 : i32
    %97 = arith.index_cast %c3_i32 : i32 to index
    %c0_52 = arith.constant 0 : index
    %c0_53 = arith.constant 0 : index
    %98 = vector.load %arg9[%97, %c0_52, %c0_53] : memref<8x16x32xf32, #tpu.memory_space<vmem>>, vector<1x16x32xf32>
    %99 = vector.shape_cast %98 : vector<1x16x32xf32> to vector<16x32xf32>
    %100 = arith.mulf %99, %88 : vector<16x32xf32>
    %101 = arith.index_cast %c3_i32 : i32 to index
    %c0_54 = arith.constant 0 : index
    %c0_55 = arith.constant 0 : index
    %102 = vector.load %arg10[%101, %c0_54, %c0_55] : memref<8x16x32xf32, #tpu.memory_space<vmem>>, vector<1x16x32xf32>
    %103 = vector.shape_cast %102 : vector<1x16x32xf32> to vector<16x32xf32>
    %104 = arith.addf %100, %103 : vector<16x32xf32>
    %105 = arith.index_cast %c3_i32 : i32 to index
    %c0_56 = arith.constant 0 : index
    %c0_57 = arith.constant 0 : index
    %106 = vector.load %arg11[%105, %c0_56, %c0_57] : memref<8x16x32xf32, #tpu.memory_space<vmem>>, vector<1x16x32xf32>
    %107 = vector.shape_cast %106 : vector<1x16x32xf32> to vector<16x32xf32>
    %108 = arith.mulf %107, %104 : vector<16x32xf32>
    %cst_58 = arith.constant dense<0.000000e+00> : vector<32xf32>
    %109 = vector.multi_reduction <add>, %108, %cst_58 [0] : vector<16x32xf32> to vector<32xf32>
    %110 = vector.shape_cast %109 : vector<32xf32> to vector<1x32xf32>
    %111 = arith.index_cast %c3_i32 : i32 to index
    %c0_59 = arith.constant 0 : index
    %112 = vector.load %arg13[%111, %c0_59] : memref<8x32xf32, #tpu.memory_space<vmem>>, vector<1x32xf32>
    tpu.vector_store %arg13[%111, %c0_59], %110 {strides = array<i32>} : memref<8x32xf32, #tpu.memory_space<vmem>>, vector<1x32xf32>,
    %c4_i32 = arith.constant 4 : i32
    %113 = arith.index_cast %c4_i32 : i32 to index
    %c0_60 = arith.constant 0 : index
    %c0_61 = arith.constant 0 : index
    %114 = vector.load %arg9[%113, %c0_60, %c0_61] : memref<8x16x32xf32, #tpu.memory_space<vmem>>, vector<1x16x32xf32>
    %115 = vector.shape_cast %114 : vector<1x16x32xf32> to vector<16x32xf32>
    %116 = arith.mulf %115, %104 : vector<16x32xf32>
    %117 = arith.index_cast %c4_i32 : i32 to index
    %c0_62 = arith.constant 0 : index
    %c0_63 = arith.constant 0 : index
    %118 = vector.load %arg10[%117, %c0_62, %c0_63] : memref<8x16x32xf32, #tpu.memory_space<vmem>>, vector<1x16x32xf32>
    %119 = vector.shape_cast %118 : vector<1x16x32xf32> to vector<16x32xf32>
    %120 = arith.addf %116, %119 : vector<16x32xf32>
    %121 = arith.index_cast %c4_i32 : i32 to index
    %c0_64 = arith.constant 0 : index
    %c0_65 = arith.constant 0 : index
    %122 = vector.load %arg11[%121, %c0_64, %c0_65] : memref<8x16x32xf32, #tpu.memory_space<vmem>>, vector<1x16x32xf32>
    %123 = vector.shape_cast %122 : vector<1x16x32xf32> to vector<16x32xf32>
    %124 = arith.mulf %123, %120 : vector<16x32xf32>
    %cst_66 = arith.constant dense<0.000000e+00> : vector<32xf32>
    %125 = vector.multi_reduction <add>, %124, %cst_66 [0] : vector<16x32xf32> to vector<32xf32>
    %126 = vector.shape_cast %125 : vector<32xf32> to vector<1x32xf32>
    %127 = arith.index_cast %c4_i32 : i32 to index
    %c0_67 = arith.constant 0 : index
    %128 = vector.load %arg13[%127, %c0_67] : memref<8x32xf32, #tpu.memory_space<vmem>>, vector<1x32xf32>
    tpu.vector_store %arg13[%127, %c0_67], %126 {strides = array<i32>} : memref<8x32xf32, #tpu.memory_space<vmem>>, vector<1x32xf32>,
    %c5_i32 = arith.constant 5 : i32
    %129 = arith.index_cast %c5_i32 : i32 to index
    %c0_68 = arith.constant 0 : index
    %c0_69 = arith.constant 0 : index
    %130 = vector.load %arg9[%129, %c0_68, %c0_69] : memref<8x16x32xf32, #tpu.memory_space<vmem>>, vector<1x16x32xf32>
    %131 = vector.shape_cast %130 : vector<1x16x32xf32> to vector<16x32xf32>
    %132 = arith.mulf %131, %120 : vector<16x32xf32>
    %133 = arith.index_cast %c5_i32 : i32 to index
    %c0_70 = arith.constant 0 : index
    %c0_71 = arith.constant 0 : index
    %134 = vector.load %arg10[%133, %c0_70, %c0_71] : memref<8x16x32xf32, #tpu.memory_space<vmem>>, vector<1x16x32xf32>
    %135 = vector.shape_cast %134 : vector<1x16x32xf32> to vector<16x32xf32>
    %136 = arith.addf %132, %135 : vector<16x32xf32>
    %137 = arith.index_cast %c5_i32 : i32 to index
    %c0_72 = arith.constant 0 : index
    %c0_73 = arith.constant 0 : index
    %138 = vector.load %arg11[%137, %c0_72, %c0_73] : memref<8x16x32xf32, #tpu.memory_space<vmem>>, vector<1x16x32xf32>
    %139 = vector.shape_cast %138 : vector<1x16x32xf32> to vector<16x32xf32>
    %140 = arith.mulf %139, %136 : vector<16x32xf32>
    %cst_74 = arith.constant dense<0.000000e+00> : vector<32xf32>
    %141 = vector.multi_reduction <add>, %140, %cst_74 [0] : vector<16x32xf32> to vector<32xf32>
    %142 = vector.shape_cast %141 : vector<32xf32> to vector<1x32xf32>
    %143 = arith.index_cast %c5_i32 : i32 to index
    %c0_75 = arith.constant 0 : index
    %144 = vector.load %arg13[%143, %c0_75] : memref<8x32xf32, #tpu.memory_space<vmem>>, vector<1x32xf32>
    tpu.vector_store %arg13[%143, %c0_75], %142 {strides = array<i32>} : memref<8x32xf32, #tpu.memory_space<vmem>>, vector<1x32xf32>,
    %c6_i32 = arith.constant 6 : i32
    %145 = arith.index_cast %c6_i32 : i32 to index
    %c0_76 = arith.constant 0 : index
    %c0_77 = arith.constant 0 : index
    %146 = vector.load %arg9[%145, %c0_76, %c0_77] : memref<8x16x32xf32, #tpu.memory_space<vmem>>, vector<1x16x32xf32>
    %147 = vector.shape_cast %146 : vector<1x16x32xf32> to vector<16x32xf32>
    %148 = arith.mulf %147, %136 : vector<16x32xf32>
    %149 = arith.index_cast %c6_i32 : i32 to index
    %c0_78 = arith.constant 0 : index
    %c0_79 = arith.constant 0 : index
    %150 = vector.load %arg10[%149, %c0_78, %c0_79] : memref<8x16x32xf32, #tpu.memory_space<vmem>>, vector<1x16x32xf32>
    %151 = vector.shape_cast %150 : vector<1x16x32xf32> to vector<16x32xf32>
    %152 = arith.addf %148, %151 : vector<16x32xf32>
    %153 = arith.index_cast %c6_i32 : i32 to index
    %c0_80 = arith.constant 0 : index
    %c0_81 = arith.constant 0 : index
    %154 = vector.load %arg11[%153, %c0_80, %c0_81] : memref<8x16x32xf32, #tpu.memory_space<vmem>>, vector<1x16x32xf32>
    %155 = vector.shape_cast %154 : vector<1x16x32xf32> to vector<16x32xf32>
    %156 = arith.mulf %155, %152 : vector<16x32xf32>
    %cst_82 = arith.constant dense<0.000000e+00> : vector<32xf32>
    %157 = vector.multi_reduction <add>, %156, %cst_82 [0] : vector<16x32xf32> to vector<32xf32>
    %158 = vector.shape_cast %157 : vector<32xf32> to vector<1x32xf32>
    %159 = arith.index_cast %c6_i32 : i32 to index
    %c0_83 = arith.constant 0 : index
    %160 = vector.load %arg13[%159, %c0_83] : memref<8x32xf32, #tpu.memory_space<vmem>>, vector<1x32xf32>
    tpu.vector_store %arg13[%159, %c0_83], %158 {strides = array<i32>} : memref<8x32xf32, #tpu.memory_space<vmem>>, vector<1x32xf32>,
    %c7_i32 = arith.constant 7 : i32
    %161 = arith.index_cast %c7_i32 : i32 to index
    %c0_84 = arith.constant 0 : index
    %c0_85 = arith.constant 0 : index
    %162 = vector.load %arg9[%161, %c0_84, %c0_85] : memref<8x16x32xf32, #tpu.memory_space<vmem>>, vector<1x16x32xf32>
    %163 = vector.shape_cast %162 : vector<1x16x32xf32> to vector<16x32xf32>
    %164 = arith.mulf %163, %152 : vector<16x32xf32>
    %165 = arith.index_cast %c7_i32 : i32 to index
    %c0_86 = arith.constant 0 : index
    %c0_87 = arith.constant 0 : index
    %166 = vector.load %arg10[%165, %c0_86, %c0_87] : memref<8x16x32xf32, #tpu.memory_space<vmem>>, vector<1x16x32xf32>
    %167 = vector.shape_cast %166 : vector<1x16x32xf32> to vector<16x32xf32>
    %168 = arith.addf %164, %167 : vector<16x32xf32>
    %169 = arith.index_cast %c7_i32 : i32 to index
    %c0_88 = arith.constant 0 : index
    %c0_89 = arith.constant 0 : index
    %170 = vector.load %arg11[%169, %c0_88, %c0_89] : memref<8x16x32xf32, #tpu.memory_space<vmem>>, vector<1x16x32xf32>
    %171 = vector.shape_cast %170 : vector<1x16x32xf32> to vector<16x32xf32>
    %172 = arith.mulf %171, %168 : vector<16x32xf32>
    %cst_90 = arith.constant dense<0.000000e+00> : vector<32xf32>
    %173 = vector.multi_reduction <add>, %172, %cst_90 [0] : vector<16x32xf32> to vector<32xf32>
    %174 = vector.shape_cast %173 : vector<32xf32> to vector<1x32xf32>
    %175 = arith.index_cast %c7_i32 : i32 to index
    %c0_91 = arith.constant 0 : index
    %176 = vector.load %arg13[%175, %c0_91] : memref<8x32xf32, #tpu.memory_space<vmem>>, vector<1x32xf32>
    tpu.vector_store %arg13[%175, %c0_91], %174 {strides = array<i32>} : memref<8x32xf32, #tpu.memory_space<vmem>>, vector<1x32xf32>,
    %c8_i32 = arith.constant 8 : i32
    %c0_92 = arith.constant 0 : index
    %c0_93 = arith.constant 0 : index
    %177 = vector.load %arg12[%c0_92, %c0_93] : memref<16x32xf32, #tpu.memory_space<vmem>>, vector<16x32xf32>
    tpu.vector_store %arg12[%c0_92, %c0_93], %168 {strides = array<i32>} : memref<16x32xf32, #tpu.memory_space<vmem>>, vector<16x32xf32>,
    %c0_94 = arith.constant 0 : index
    %c0_95 = arith.constant 0 : index
    %178 = vector.load %arg13[%c0_94, %c0_95] : memref<8x32xf32, #tpu.memory_space<vmem>>, vector<8x32xf32>
    %c0_96 = arith.constant 0 : index
    %c0_97 = arith.constant 0 : index
    %179 = vector.load %arg7[%c0_96, %c0_97] : memref<1x32xf32, #tpu.memory_space<vmem>>, vector<1x32xf32>
    %180 = vector.broadcast %179 : vector<1x32xf32> to vector<8x32xf32>
    %181 = arith.mulf %180, %4 : vector<8x32xf32>
    %182 = arith.addf %178, %181 : vector<8x32xf32>
    %c0_98 = arith.constant 0 : index
    %c0_99 = arith.constant 0 : index
    %c0_100 = arith.constant 0 : index
    %183 = vector.load %arg8[%c0_98, %c0_99, %c0_100] : memref<1x8x32xf32, #tpu.memory_space<vmem>>, vector<1x8x32xf32>
    %184 = vector.shape_cast %183 : vector<1x8x32xf32> to vector<8x32xf32>
    %185 = vector.shape_cast %182 : vector<8x32xf32> to vector<1x8x32xf32>
    tpu.vector_store %arg8[%c0_98, %c0_99, %c0_100], %185 {strides = array<i32>} : memref<1x8x32xf32, #tpu.memory_space<vmem>>, vector<1x8x32xf32>,
    return
  }
  func.func @transform_0(%arg0: i32, %arg1: i32) -> (i32, i32, i32) {
    %c0_i32 = arith.constant 0 : i32
    %c0_i32_0 = arith.constant 0 : i32
    return %arg0, %arg1, %c0_i32 : i32, i32, i32
  }
  func.func @transform_1(%arg0: i32, %arg1: i32) -> (i32, i32) {
    %c0_i32 = arith.constant 0 : i32
    %c0_i32_0 = arith.constant 0 : i32
    %c0_i32_1 = arith.constant 0 : i32
    return %c0_i32, %c0_i32_0 : i32, i32
  }
  func.func @transform_2(%arg0: i32, %arg1: i32) -> (i32, i32) {
    %c0_i32 = arith.constant 0 : i32
    %c0_i32_0 = arith.constant 0 : i32
    %c0_i32_1 = arith.constant 0 : i32
    return %c0_i32, %c0_i32_0 : i32, i32
  }
  func.func @transform_3(%arg0: i32, %arg1: i32) -> (i32, i32) {
    %c0_i32 = arith.constant 0 : i32
    %c0_i32_0 = arith.constant 0 : i32
    %c0_i32_1 = arith.constant 0 : i32
    return %c0_i32, %c0_i32_0 : i32, i32
  }
  func.func @transform_4(%arg0: i32, %arg1: i32) -> (i32, i32) {
    %c0_i32 = arith.constant 0 : i32
    %c0_i32_0 = arith.constant 0 : i32
    %c0_i32_1 = arith.constant 0 : i32
    return %c0_i32, %c0_i32_0 : i32, i32
  }
  func.func @transform_5(%arg0: i32, %arg1: i32) -> (i32, i32) {
    %c0_i32 = arith.constant 0 : i32
    %c0_i32_0 = arith.constant 0 : i32
    %c0_i32_1 = arith.constant 0 : i32
    return %c0_i32, %c0_i32_0 : i32, i32
  }
  func.func @transform_6(%arg0: i32, %arg1: i32) -> (i32, i32, i32) {
    %c0_i32 = arith.constant 0 : i32
    %c0_i32_0 = arith.constant 0 : i32
    return %arg0, %arg1, %c0_i32 : i32, i32, i32
  }
}

</mosaic_0001>

<bundles_post_ra>
// kernel: tpu_custom_call.1
= control target key start
LH: loop header
LB: loop body
LE: loop exit
PB: predicated region body
PF: predicated region fallthrough
CT: control target
= control target key end

     0   :  { %s2334_s0 = inlined_call_operand.hbm [shape: f32[2,8,32], index: 0, kind: input, shape index: {}]   ;;  %s2335_s1 = inlined_call_operand.hbm [shape: bf16[32,40], index: 1, kind: input, shape index: {}]   ;;  %s2336_s2 = inlined_call_operand.hbm [shape: bf16[8,32], index: 2, kind: input, shape index: {}]   ;;  %s2337_s3 = inlined_call_operand.hbm [shape: f32[1,32], index: 3, kind: input, shape index: {}]   ;;  %s2338_s4 = inlined_call_operand.hbm [shape: f32[16,32], index: 4, kind: input, shape index: {}]   ;;  %s2339_s5 = inlined_call_operand.hbm [shape: f32[1,32], index: 5, kind: input, shape index: {}]   ;;  %s2340_s6 = inlined_call_operand.hbm [shape: f32[2,8,32], index: 6, kind: output, shape index: {}]  }
   0x1   :  { %2346 = sst [smem:[#allocation24_spill]] %s2335_s1 }
   0x2   :  { %11 = vsyncpa [#allocation8], 0 }
   0x3   :  { %13 = vsyncpa [#allocation8 + $0x1], 0 }
   0x4   :  { %14 = vsyncpa [#allocation11], 0 }
   0x5   :  { %15 = vsyncpa [#allocation14], 0 }
   0x6   :  { %16 = vsyncpa [#allocation17], 0 }
   0x7   :  { %17 = vsyncpa [#allocation9], 0 }
   0x8   :  { %19 = vsyncpa [#allocation9 + $0x1], 0  ;;  %s1834_s21 = smov 0   ;;  %s1836_s22 = smov 0  }
   0x9   :  { %s1838_s23 = smov 0   ;;  %s1840_s24 = smov 0  }
   0xa   :  { %s1842_s25 = smov 0   ;;  %s1844_s26 = smov 0  }
   0xb LB: > { %s2341_s27 = sadd.s32 4294967295, %s1783_s26   ;;  %p1311_p0 = scmp.ge.s32.totalorder %s1783_s26, 1  ;;  %s1783_s26 = sphi %s1844_s26, %s25_s26   ;;  %s1779_s25 = sphi %s1842_s25, %s2368_s25   ;;  %s1775_s24 = sphi %s1840_s24, %s2367_s24   ;;  %s1771_s23 = sphi %s1838_s23, %s2366_s23   ;;  %s1767_s22 = sphi %s1836_s22, %s2365_s22   ;;  %s1763_s21 = sphi %s1834_s21, %s2364_s21  }
   0xc   : > { %p1868_p1 = scmp.eq.s32.totalorder %s2341_s27, 0  ;;  %p203_p2 = scmp.lt.s32.totalorder %s1783_s26, 3 }
   0xd   : > { %s1785_s30 = smov [#allocation10]   ;;  %s1786_s9 = smov [#allocation13]  }
   0xe   : > { %s2347_s28 = scalar_select %p1868_p1, 1, 0 }
   0xf   : > { %p1873_p3 = pnand %p1311_p0, %p203_p2  ;;  %s215_s7 = sshll.u32 %s1785_s30, 4  ;;  %s1877_s7 = int_to_ptr.vmem [resolvable:$true] %s215_s7 }
  0x10   : > { %s240_s10 = sshll.u32 %s1786_s9, 4  ;;  %s1787_s11 = smov [#allocation12]   ;;  %s1888_s10 = int_to_ptr.vmem [resolvable:$true] %s240_s10 }
  0x11   : > { %s2348_s29 = scalar_select %p1873_p3, 1, 0 }
  0x12   : > { %p1381_p4 = pneg %p1873_p3  ;;  %s1890_s12 = sshll.u32 %s1787_s11, 4  ;;  %s230_s12 = int_to_ptr.vmem [resolvable:$true] %s1890_s12 }
  0x13   : > { %s2350_s1 = sld [smem:[#allocation24_spill]] }
  0x14   : > { %p1884_p6 = pnand %p1381_p4, %p1868_p1 }
  0x16   : > { %p1900_p8 = pneg %p1884_p6 }
  0x19   : > { %s1519_s15 = scalar_lea.hbm %s2350_s1, 256 }
  0x1a   : > { %p1520_p7 = scmp.ne.s32.totalorder %s2350_s1, %s1519_s15  ;;  %p1526_p11 = scmp.lt.u32.totalorder %s1519_s15, %s2350_s1 }
  0x1c   : > { %p1522_p9 = pnand %p1900_p8, %p1520_p7 }
  0x1e   : > { %p1523_p10 = pneg %p1522_p9 }
  0x20   : > { %p1528_p12 = pnand %p1526_p11, %p1523_p10 }
  0x22   : > { %1531 = shalt.err (!%p1528_p12)
}
  0x23   : > { %s1532_s30 = scalar_lea.vmem %s1877_s7, 256  ;;  %p1540_p4 = scmp.lt.s32.totalorder %s1877_s7, %s1877_s7 }
  0x24   : > { %p1533_p13 = scmp.ne.s32.totalorder %s1877_s7, %s1532_s30  ;;  %p1541_p5 = scmp.lt.s32.totalorder %s1532_s30, %s1532_s30 }
  0x26   : > { %p1535_p0 = pnand %p1533_p13, %p1900_p8  ;;  %p1542_p7 = por %p1541_p5, %p1540_p4 }
  0x28   : > { %p1536_p2 = pneg %p1535_p0 }
  0x2a   : > { %p1543_p9 = pnand %p1542_p7, %p1536_p2 }
  0x2c   : > { %1546 = shalt.err (!%p1543_p9)
}
  0x2d   : > { %s1788_s9 = smov 64   ;;  %s1789_s11 = smov 4  }
  0x2e   : > { %1384 = dma.hbm_to_vmem [thread:$0]  (!%p1884_p6), %s2350_s1, 256, %s1877_s7, [#allocation11], %s1788_s9, %s1788_s9, %s1789_s11  }
  0x2f   : > { %s1547_s17 = scalar_lea.hbm %s2337_s3, 16 }
  0x30   : > { %p1548_p5 = scmp.ne.s32.totalorder %s2337_s3, %s1547_s17  ;;  %p1554_p12 = scmp.lt.u32.totalorder %s1547_s17, %s2337_s3 }
  0x32   : > { %p1550_p10 = pnand %p1548_p5, %p1900_p8 }
  0x34   : > { %p1551_p11 = pneg %p1550_p10 }
  0x36   : > { %p1556_p13 = pnand %p1554_p12, %p1551_p11 }
  0x38   : > { %1559 = shalt.err (!%p1556_p13)
}
  0x39   : > { %s1560_s7 = scalar_lea.vmem %s1888_s10, 16  ;;  %s1567_s9 = scalar_lea.vmem %s1888_s10, 32 }
  0x3a   : > { %p1561_p0 = scmp.ne.s32.totalorder %s1888_s10, %s1560_s7  ;;  %p1568_p7 = scmp.lt.s32.totalorder %s1888_s10, %s1888_s10 }
  0x3b   : > { %p1569_p9 = scmp.lt.s32.totalorder %s1567_s9, %s1560_s7 }
  0x3c   : > { %p1563_p2 = pnand %p1561_p0, %p1900_p8 }
  0x3d   : > { %p1570_p5 = por %p1569_p9, %p1568_p7 }
  0x3e   : > { %p1564_p4 = pneg %p1563_p2 }
  0x40   : > { %p1571_p10 = pnand %p1570_p5, %p1564_p4 }
  0x42   : > { %1574 = shalt.err (!%p1571_p10)
}
  0x43   : > { %1390 = dma.hbm_to_vmem [thread:$0]  (!%p1884_p6), %s2337_s3, 16, %s1888_s10, [#allocation14]  }
  0x44   : > { %s1575_s15 = scalar_lea.hbm %s2336_s2, 64 }
  0x45   : > { %p1576_p11 = scmp.ne.s32.totalorder %s2336_s2, %s1575_s15  ;;  %p1582_p0 = scmp.lt.u32.totalorder %s1575_s15, %s2336_s2 }
  0x47   : > { %p1578_p12 = pnand %p1576_p11, %p1900_p8 }
  0x49   : > { %p1579_p13 = pneg %p1578_p12 }
  0x4b   : > { %p1584_p2 = pnand %p1582_p0, %p1579_p13 }
  0x4d   : > { %1587 = shalt.err (!%p1584_p2)
}
  0x4e   : > { %s1588_s30 = scalar_lea.vmem %s230_s12, 64  ;;  %p1596_p5 = scmp.lt.s32.totalorder %s230_s12, %s230_s12 }
  0x4f   : > { %p1589_p4 = scmp.ne.s32.totalorder %s230_s12, %s1588_s30  ;;  %p1597_p10 = scmp.lt.s32.totalorder %s1588_s30, %s1588_s30 }
  0x51   : > { %p1591_p7 = pnand %p1589_p4, %p1900_p8  ;;  %p1598_p3 = por %p1597_p10, %p1596_p5 }
  0x53   : > { %p1592_p9 = pneg %p1591_p7 }
  0x55   : > { %p1599_p1 = pnand %p1598_p3, %p1592_p9 }
  0x57   : > { %1602 = shalt.err (!%p1599_p1)
}
  0x58   : > { %1387 = dma.hbm_to_vmem [thread:$0]  (!%p1884_p6), %s2336_s2, 64, %s230_s12, [#allocation11]  }
  0x59   : > { %s1790_s9 = smov [#allocation15]   ;;  %s1603_s14 = scalar_lea.hbm %s2338_s4, 256 }
  0x5a   : > { %s250_s27 = sshll.u32 %s1790_s9, 4  ;;  %p1604_p11 = scmp.ne.s32.totalorder %s2338_s4, %s1603_s14  ;;  %s251_s27 = int_to_ptr.vmem [resolvable:$true] %s250_s27 }
  0x5b   : > { %p1610_p12 = scmp.lt.u32.totalorder %s1603_s14, %s2338_s4 }
  0x5c   : > { %p1606_p1 = pnand %p1604_p11, %p1900_p8 }
  0x5e   : > { %p1607_p3 = pneg %p1606_p1 }
  0x60   : > { %p1612_p13 = pnand %p1610_p12, %p1607_p3 }
  0x62   : > { %1615 = shalt.err (!%p1612_p13)
}
  0x63   : > { %s1616_s12 = scalar_lea.vmem %s251_s27, 256  ;;  %p1624_p7 = scmp.lt.s32.totalorder %s251_s27, %s251_s27 }
  0x64   : > { %p1617_p0 = scmp.ne.s32.totalorder %s251_s27, %s1616_s12  ;;  %p1625_p9 = scmp.lt.s32.totalorder %s1616_s12, %s1616_s12 }
  0x66   : > { %p1619_p2 = pnand %p1617_p0, %p1900_p8  ;;  %p1626_p5 = por %p1625_p9, %p1624_p7 }
  0x68   : > { %p1620_p4 = pneg %p1619_p2 }
  0x6a   : > { %p1627_p10 = pnand %p1626_p5, %p1620_p4 }
  0x6c   : > { %1630 = shalt.err (!%p1627_p10)
}
  0x6d   : > { %s1791_s20 = smov 128   ;;  %s1792_s30 = smov 8  }
  0x6e   : > { %1393 = dma.hbm_to_vmem [thread:$0]  (!%p1884_p6), %s2338_s4, 256, %s251_s27, [#allocation14], %s1791_s20, %s1791_s20, %s1792_s30  }
  0x6f   : > { %s1793_s9 = smov [#allocation16]   ;;  %s1631_s15 = scalar_lea.hbm %s2339_s5, 16 }
  0x70   : > { %s264_s11 = sshll.u32 %s1793_s9, 4  ;;  %p1632_p11 = scmp.ne.s32.totalorder %s2339_s5, %s1631_s15  ;;  %s265_s11 = int_to_ptr.vmem [resolvable:$true] %s264_s11 }
  0x71   : > { %p1638_p12 = scmp.lt.u32.totalorder %s1631_s15, %s2339_s5 }
  0x72   : > { %p1634_p1 = pnand %p1632_p11, %p1900_p8 }
  0x74   : > { %p1635_p3 = pneg %p1634_p1 }
  0x76   : > { %p1640_p13 = pnand %p1638_p12, %p1635_p3 }
  0x78   : > { %1643 = shalt.err (!%p1640_p13)
}
  0x79   : > { %s1644_s27 = scalar_lea.vmem %s265_s11, 16  ;;  %s1651_s20 = scalar_lea.vmem %s265_s11, 32 }
  0x7a   : > { %p1645_p0 = scmp.ne.s32.totalorder %s265_s11, %s1644_s27  ;;  %p1652_p7 = scmp.lt.s32.totalorder %s265_s11, %s265_s11 }
  0x7b   : > { %p1653_p9 = scmp.lt.s32.totalorder %s1651_s20, %s1644_s27 }
  0x7c   : > { %p1647_p2 = pnand %p1645_p0, %p1900_p8 }
  0x7d   : > { %p1654_p5 = por %p1653_p9, %p1652_p7 }
  0x7e   : > { %p1648_p4 = pneg %p1647_p2 }
  0x80   : > { %p1655_p10 = pnand %p1654_p5, %p1648_p4 }
  0x82   : > { %1658 = shalt.err (!%p1655_p10)
}
  0x83   : > { %1396 = dma.hbm_to_vmem [thread:$0]  (!%p1884_p6), %s2339_s5, 16, %s265_s11, [#allocation17]  }
  0x84   : > { %s1310_s18 = sadd.s32 4294967294, %s1783_s26   ;;  %s37_s7 = sadd.s32 1, %s1779_s25 }
  0x85   : > { %s46_s8 = sadd.s32 1, %s1771_s23  ;;  %p39_p8 = scmp.ge.s32.totalorder %s37_s7, 2 }
  0x86   : > { %p53_p11 = scmp.ne.s32.totalorder %s1771_s23, %s1767_s22  ;;  %p54_p1 = scmp.eq.s32.totalorder %s1783_s26, 0 }
  0x87   : > { %p59_p3 = scmp.ne.s32.totalorder %s1767_s22, %s1763_s21  ;;  %s2370_s7 = smov (%p39_p8, %s37_s7), 0 }
  0x88   : > { %p2010_p12 = por %p54_p1, %p53_p11  ;;  %p2353_p13 = scmp.ne.s32.totalorder %s2347_s28, 0 }
  0x89   : > { %s41_s13 = ssub.s32 %s1779_s25, %s2370_s7  ;;  %s2355_s14 = sadd.s32 4294967295, %s1783_s26  }
  0x8a   : > { %p2016_p6 = por %p2353_p13, %p59_p3  ;;  %p190_p0 = scmp.eq.s32.totalorder %s2355_s14, 1 }
  0x8b   : > { %p44_p2 = scmp.eq.s32.totalorder %s41_s13, 0  ;;  %p196_p4 = scmp.eq.s32.totalorder %s1310_s18, 1 }
  0x8c   : > { %p2024_p7 = por %p190_p0, %p53_p11  ;;  %p1410_p9 = scmp.lt.s32.totalorder %s1783_s26, 2 }
  0x8d   : > { %s2030_s16 = scalar_select %p44_p2, %s1771_s23, %s46_s8  }
  0x8e   : > { %s2356_s15 = scalar_select %p2024_p7, 1, 0 }
  0x8f   : > { %p2032_p5 = por %p196_p4, %p59_p3  ;;  %s275_s19 = sand.u32 1, %s1771_s23  }
  0x90   : > { %s1318_s12 = sshll.u32 %s275_s19, 3  ;;  %s1319_s27 = sshll.u32 %s1779_s25, 7 }
  0x91   : > { %s2357_s17 = scalar_select %p2032_p5, 1, 0 }
  0x92   : > { %s2041_s10 = scalar_lea.hbm %s2334_s0, %s1319_s27  ;;  %s279_s18 = scalar_lea.vmem [#allocation7], %s1318_s12 }
  0x93   : > { %s287_s13 = sshll.u32 %s279_s18, 4  ;;  %p2047_p10 = pnand %p1410_p9, %p2010_p12  ;;  %s2043_s13 = int_to_ptr.vmem [resolvable:$true] %s287_s13 }
  0x94   : > { %s276_s14 = scalar_lea.sflag [#allocation8], %s275_s19  ;;  %s1659_s1 = scalar_lea.hbm %s2041_s10, 128 }
  0x95   : > { %p1660_p8 = scmp.ne.s32.totalorder %s2041_s10, %s1659_s1  ;;  %p1661_p11 = pneg %p2047_p10 }
  0x96   : > { %s1664_s20 = scalar_lea.hbm %s2334_s0, 256  ;;  %p1665_p12 = scmp.lt.u32.totalorder %s2041_s10, %s2334_s0 }
  0x97   : > { %p1662_p1 = pnand %p1661_p11, %p1660_p8  ;;  %p1666_p13 = scmp.lt.u32.totalorder %s1664_s20, %s1659_s1 }
  0x98   : > { %p1668_p2 = scmp.lt.u32.totalorder %s1659_s1, %s2041_s10 }
  0x99   : > { %p1663_p3 = pneg %p1662_p1  ;;  %p1667_p0 = por %p1666_p13, %p1665_p12 }
  0x9b   : > { %p1669_p4 = por %p1668_p2, %p1667_p0 }
  0x9d   : > { %p1670_p9 = pnand %p1669_p4, %p1663_p3 }
  0x9f   : > { %1673 = shalt.err (!%p1670_p9)
}
  0xa0   : > { %s1674_s19 = scalar_lea.vmem %s2043_s13, 128  ;;  %s1794_s18 = smov [#allocation7]  }
  0xa1   : > { %p1675_p8 = scmp.ne.s32.totalorder %s2043_s13, %s1674_s19  ;;  %s1679_s12 = sshll.u32 %s1794_s18, 4  ;;  %s1680_s12 = int_to_ptr.vmem [resolvable:$false] %s1679_s12 }
  0xa2   : > { %s1681_s27 = scalar_lea.vmem %s1680_s12, 256  ;;  %p1682_p7 = scmp.lt.s32.totalorder %s2043_s13, %s1680_s12 }
  0xa3   : > { %p1677_p1 = pnand %p1675_p8, %p1661_p11  ;;  %p1683_p12 = scmp.lt.s32.totalorder %s1681_s27, %s1674_s19 }
  0xa5   : > { %p1678_p5 = pneg %p1677_p1  ;;  %p1684_p13 = por %p1683_p12, %p1682_p7 }
  0xa7   : > { %p1685_p0 = pnand %p1684_p13, %p1678_p5 }
  0xa9   : > { %1688 = shalt.err (!%p1685_p0)
}
  0xaa   : > { %1400 = dma.hbm_to_vmem [thread:$0]  (!%p2047_p10), %s2041_s10, 128, %s2043_s13, %s276_s14  }
  0xab   : > { %p2359_p3 = scmp.ne.s32.totalorder %s2348_s29, 0 }
  0xac   : > { %s2079_s1 = sand.u32 (!%p2359_p3), 1, %s1767_s22  }
  0xad   : > { %296 = sbr.rel (%p2359_p3) target bundleno = 766 (0x2fe), region = 44  ;;  %s1321_s20 = sshll.u32 (!%p2359_p3), %s2079_s1, 3 }
  0xae   : > { %s299_s9 = scalar_lea.sflag (!%p2359_p3), [#allocation8], %s2079_s1  ;;  %s302_s30 = scalar_lea.vmem (!%p2359_p3), [#allocation7], %s1321_s20 }
  0xb4   : > { %1742 = dma.done.wait (%p2016_p6), %s299_s9, 128  }
  0xb5   : > { %1744 = vsyncadd (%p2016_p6), %s299_s9, 4294967168  ;;  %p2360_p7 = scmp.ne.s32.totalorder %s2347_s28, 0 }
  0xb7   : > { %1746 = dma.done.wait (%p2360_p7), [#allocation11], 320  }
  0xb8   : > { %1748 = vsyncadd (%p2360_p7), [#allocation11], 4294966976 }
  0xb9   : > { %1750 = dma.done.wait (%p2360_p7), [#allocation14], 272  }
  0xba   : > { %1752 = vsyncadd (%p2360_p7), [#allocation14], 4294967024 }
  0xbb   : > { %1754 = dma.done.wait (%p2360_p7), [#allocation17], 16  }
  0xbc   : > { %1756 = vsyncadd (%p2360_p7), [#allocation17], 4294967280  ;;  %vm356_vm0 = vcmask 261120   ;;  %v1795_v0 = vmov 0.0   ;;  %vm1796_vm1 = vmmov 0   ;;  %v1477_v1 = vld [vmem:[#allocation10] sm:$0xff]   ;;  %v505_v7 = vlaneseq }
  0xbd   : > { %357 = vst.msk [vmem:[#allocation5] sm:$0xff] %vm356_vm0, %v1795_v0  ;;  %358 = vst.msk [vmem:[#allocation5 + $0x8] sm:$0xff] %vm356_vm0, %v1795_v0  ;;  %1343 = vmatprep.subr.bf16.mxu0 %v1795_v0  ;;  %1347 = vmatprep.mubr.msk.bf16.mxu0 %vm1796_vm1, %v1795_v0  ;;  %v1478_v2 = vld [vmem:[#allocation10 + $0x8] sm:$0xff]   ;;  %v2103_v3 = vld [vmem:[%s302_s30] sm:$0xff]  ;;  %vm434_vm2 = vcmask 1043456   ;;  %vm430_vm3 = vcmask 64512  }
  0xbe   : > { %1351 = vmatprep.subr.bf16.mxu1 %v1795_v0  ;;  %1353 = vmatprep.mubr.msk.bf16.mxu1 %vm1796_vm1, %v1795_v0  ;;  %v360_v4 = vpack.c.bf16 %v2103_v3, %v2103_v3  ;;  %v422_v5 = vld [vmem:[#allocation12] sm:$0xf]  ;;  %v2108_v8 = vshrl.u32 %v505_v7, 7  ;;  %v1331_v62 = vld [vmem:[#allocation13] ss:$0 sm:$0xff]  ;;  %vm976_vm6 = vcmask 253952  }
  0xbf   : > { %1344 = vmatpush3.bf16.msra.mxu0 %v1477_v1  ;;  %v436_v6 = vsel %vm434_vm2, %v422_v5, 0  ;;  %s1335_s28 = sshll.u32 %s1775_s24, 7  ;;  %s350_s29 = scalar_lea.vmem [#allocation18], %s1321_s20 }
  0xc0   : > { %1345 = vmatprep.subr.bf16.mxu0 %v1795_v0  ;;  %1352 = vmatpush3.bf16.msra.mxu1 %v436_v6  ;;  %v2111_v9 = vsub.s32 0, %v2108_v8  ;;  %v719_v10 = vsub.s32 1, %v2108_v8  ;;  %v731_v18 = vsub.s32 2, %v2108_v8  ;;  %v743_v20 = vsub.s32 3, %v2108_v8  ;;  %s1181_s11 = sshll.u32 %s350_s29, 4  ;;  %s2284_s8 = scalar_lea.hbm %s2340_s6, %s1335_s28  ;;  %s2286_s11 = int_to_ptr.vmem [resolvable:$true] %s1181_s11 }
  0xc1   : > { %v755_v22 = vsub.s32 4, %v2108_v8  ;;  %v767_v24 = vsub.s32 5, %v2108_v8  ;;  %v779_v26 = vsub.s32 6, %v2108_v8  ;;  %v791_v28 = vsub.s32 7, %v2108_v8  ;;  %s1167_s14 = scalar_lea.sflag [#allocation9], %s2079_s1  ;;  %s1689_s19 = scalar_lea.vmem %s2286_s11, 128 }
  0xc2   : > { %p1690_p6 = scmp.ne.s32.totalorder %s2286_s11, %s1689_s19  ;;  %p2361_p5 = scmp.ne.s32.totalorder %s2356_s15, 0 }
  0xc3   : > { %1346 = vmatpush3.bf16.msra.mxu0 %v1478_v2  ;;  %s1798_s24 = smov [#allocation18]  }
  0xc4   : > { %p1691_p10 = pnand %p1690_p6, %p2361_p5  ;;  %s1693_s18 = sshll.u32 %s1798_s24, 4  ;;  %s1694_s18 = int_to_ptr.vmem [resolvable:$false] %s1693_s18 }
  0xc5   : > { %s1695_s12 = scalar_lea.vmem %s1694_s18, 256  ;;  %p1696_p2 = scmp.lt.s32.totalorder %s2286_s11, %s1694_s18 }
  0xc6   : > { %1348 = vmatmul.mubr.msk.bf16.vlgmr.msra.gmra.mrb[0].mxu0 %vm356_vm0, %v360_v4  ;;  %p1692_p11 = pneg %p1691_p10  ;;  %p1697_p4 = scmp.lt.s32.totalorder %s1695_s12, %s1689_s19 }
  0xc8   : > { %p1698_p9 = por %p1697_p4, %p1696_p2 }
  0xca   : > { %p1699_p8 = pnand %p1698_p9, %p1692_p11 }
 0x199   : > { %v415_v11 = vpop.f32.mrb[0].mxu0 }
 0x19a   : > { %v1349_v12 = vpop.f32.mrb[1].mxu0  ;;  %v720_v13 = vrot.slane %v415_v11, %v719_v10  ;;  %v708_v14 = vrot.slane %v415_v11, %v2111_v9  ;;  %v421_v15 = vpack.c.bf16 %v415_v11, %v415_v11  ;;  %v732_v19 = vrot.slane %v415_v11, %v731_v18 }
 0x19b   : > { %v418_v16 = vpop.f32.mrb[2].mxu0  ;;  %v744_v21 = vrot.slane %v415_v11, %v743_v20  ;;  %v756_v23 = vrot.slane %v415_v11, %v755_v22  ;;  %v768_v25 = vrot.slane %v415_v11, %v767_v24  ;;  %v780_v27 = vrot.slane %v415_v11, %v779_v26  ;;  %v493_v12 = vld [vmem:[#allocation15 + $0x8] sm:$0xff] }
 0x19c   : > { %723 = vbcast.lane.b32.xlu1 %v720_v13, 264  ;;  %711 = vbcast.lane.b32.xlu0 %v708_v14, 264  ;;  %v1350_v17 = vpop.f32.mrb[3].mxu0  ;;  %v792_v29 = vrot.slane %v415_v11, %v791_v28  ;;  %v492_v11 = vld [vmem:[#allocation15] sm:$0xff]  ;;  %v1797_v16 = vmov 1966171168  }
 0x19d   : > { %1354 = vmatmul.mubr.msk.bf16.vlgmr.msra.gmra.mrb[0].mxu1 %vm430_vm3, %v421_v15  ;;  %v496_v15 = vmul.f32 1.442695, %v493_v12  ;;  %v503_v17 = vunpack.c.l.s4 %v1797_v16 }
 0x1a0   : > { %727 = vbcast.lane.b32.xlu1 %v720_v13, 272  ;;  %715 = vbcast.lane.b32.xlu0 %v708_v14, 272 }
 0x1a4   : > { %739 = vbcast.lane.b32.xlu1 %v732_v19, 272  ;;  %735 = vbcast.lane.b32.xlu0 %v732_v19, 264 }
 0x1a8   : > { %751 = vbcast.lane.b32.xlu1 %v744_v21, 272  ;;  %747 = vbcast.lane.b32.xlu0 %v744_v21, 264 }
 0x1ac   : > { %763 = vbcast.lane.b32.xlu1 %v756_v23, 272  ;;  %759 = vbcast.lane.b32.xlu0 %v756_v23, 264 }
 0x1b0   : > { %775 = vbcast.lane.b32.xlu1 %v768_v25, 272  ;;  %771 = vbcast.lane.b32.xlu0 %v768_v25, 264 }
 0x1b4   : > { %787 = vbcast.lane.b32.xlu1 %v780_v27, 272  ;;  %783 = vbcast.lane.b32.xlu0 %v780_v27, 264 }
 0x1b8   : > { %799 = vbcast.lane.b32.xlu1 %v792_v29, 272  ;;  %795 = vbcast.lane.b32.xlu0 %v792_v29, 264 }
 0x1bc   : > { %879 = vbcast.lane.b32.xlu1 %v708_v14, 288  ;;  %875 = vbcast.lane.b32.xlu0 %v708_v14, 280 }
 0x1c0   : > { %887 = vbcast.lane.b32.xlu1 %v720_v13, 288  ;;  %883 = vbcast.lane.b32.xlu0 %v720_v13, 280  ;;  %v494_v13 = vmul.f32 1.442695, %v492_v11 }
 0x1c4   : > { %895 = vbcast.lane.b32.xlu1 %v732_v19, 288  ;;  %891 = vbcast.lane.b32.xlu0 %v732_v19, 280  ;;  %v504_v19 = vunpack.c.0.s8 %v503_v17 }
 0x1c6   : > { %v2171_v24 = vsub.s32 %v504_v19, %v2108_v8 }
 0x1c8   : > { %903 = vbcast.lane.b32.xlu1 %v744_v21, 288  ;;  %899 = vbcast.lane.b32.xlu0 %v744_v21, 280 }
 0x1cc   : > { %911 = vbcast.lane.b32.xlu1 %v756_v23, 288  ;;  %907 = vbcast.lane.b32.xlu0 %v756_v23, 280 }
 0x1d0   : > { %919 = vbcast.lane.b32.xlu1 %v768_v25, 288  ;;  %915 = vbcast.lane.b32.xlu0 %v768_v25, 280 }
 0x1d4   : > { %927 = vbcast.lane.b32.xlu1 %v780_v27, 288  ;;  %923 = vbcast.lane.b32.xlu0 %v780_v27, 280 }
 0x1d8   : > { %935 = vbcast.lane.b32.xlu1 %v792_v29, 288  ;;  %931 = vbcast.lane.b32.xlu0 %v792_v29, 280 }
 0x20e   : > { %v2121_v30 = vpop.permute.xlu1 %723  ;;  %v2123_v31 = vpop.permute.xlu0 %711 }
 0x212   : > { %v2125_v32 = vpop.permute.xlu1 %727  ;;  %v2127_v33 = vpop.permute.xlu0 %715 }
 0x216   : > { %v2129_v34 = vpop.permute.xlu1 %739  ;;  %v2131_v35 = vpop.permute.xlu0 %735 }
 0x21a   : > { %v2133_v36 = vpop.permute.xlu1 %751  ;;  %v2135_v37 = vpop.permute.xlu0 %747 }
 0x21e   : > { %v2137_v38 = vpop.permute.xlu1 %763  ;;  %v2139_v39 = vpop.permute.xlu0 %759 }
 0x222   : > { %v2141_v40 = vpop.permute.xlu1 %775  ;;  %v2143_v41 = vpop.permute.xlu0 %771 }
 0x226   : > { %v2145_v42 = vpop.permute.xlu1 %787  ;;  %v2147_v43 = vpop.permute.xlu0 %783 }
 0x22a   : > { %v2149_v44 = vpop.permute.xlu1 %799  ;;  %v2151_v45 = vpop.permute.xlu0 %795 }
 0x22e   : > { %v880_v46 = vpop.permute.xlu1 %879  ;;  %v876_v47 = vpop.permute.xlu0 %875 }
 0x22f   : > { %938 = vst.msk [vmem:[#allocation4 + $0x8] sm:$0xff] %vm356_vm0, %v880_v46  ;;  %937 = vst.msk [vmem:[#allocation4] sm:$0xff] %vm356_vm0, %v876_v47 }
 0x232   : > { %v888_v48 = vpop.permute.xlu1 %887  ;;  %v884_v49 = vpop.permute.xlu0 %883 }
 0x233   : > { %940 = vst.msk [vmem:[#allocation4 + $0x18] sm:$0xff] %vm356_vm0, %v888_v48  ;;  %939 = vst.msk [vmem:[#allocation4 + $0x10] sm:$0xff] %vm356_vm0, %v884_v49 }
 0x236   : > { %v896_v50 = vpop.permute.xlu1 %895  ;;  %v892_v51 = vpop.permute.xlu0 %891 }
 0x237   : > { %942 = vst.msk [vmem:[#allocation4 + $0x28] sm:$0xff] %vm356_vm0, %v896_v50  ;;  %941 = vst.msk [vmem:[#allocation4 + $0x20] sm:$0xff] %vm356_vm0, %v892_v51 }
 0x23a   : > { %v904_v52 = vpop.permute.xlu1 %903  ;;  %v900_v53 = vpop.permute.xlu0 %899 }
 0x23b   : > { %944 = vst.msk [vmem:[#allocation4 + $0x38] sm:$0xff] %vm356_vm0, %v904_v52  ;;  %943 = vst.msk [vmem:[#allocation4 + $0x30] sm:$0xff] %vm356_vm0, %v900_v53 }
 0x23e   : > { %v912_v54 = vpop.permute.xlu1 %911  ;;  %v908_v55 = vpop.permute.xlu0 %907 }
 0x23f   : > { %946 = vst.msk [vmem:[#allocation4 + $0x48] sm:$0xff] %vm356_vm0, %v912_v54  ;;  %945 = vst.msk [vmem:[#allocation4 + $0x40] sm:$0xff] %vm356_vm0, %v908_v55 }
 0x242   : > { %v920_v56 = vpop.permute.xlu1 %919  ;;  %v916_v57 = vpop.permute.xlu0 %915 }
 0x243   : > { %948 = vst.msk [vmem:[#allocation4 + $0x58] sm:$0xff] %vm356_vm0, %v920_v56  ;;  %947 = vst.msk [vmem:[#allocation4 + $0x50] sm:$0xff] %vm356_vm0, %v916_v57 }
 0x246   : > { %v928_v58 = vpop.permute.xlu1 %927  ;;  %v924_v59 = vpop.permute.xlu0 %923 }
 0x247   : > { %950 = vst.msk [vmem:[#allocation4 + $0x68] sm:$0xff] %vm356_vm0, %v928_v58  ;;  %949 = vst.msk [vmem:[#allocation4 + $0x60] sm:$0xff] %vm356_vm0, %v924_v59 }
 0x24a   : > { %v936_v60 = vpop.permute.xlu1 %935  ;;  %v932_v61 = vpop.permute.xlu0 %931 }
 0x24b   : > { %952 = vst.msk [vmem:[#allocation4 + $0x78] sm:$0xff] %vm356_vm0, %v936_v60  ;;  %951 = vst.msk [vmem:[#allocation4 + $0x70] sm:$0xff] %vm356_vm0, %v932_v61 }
 0x270   : > { %v472_v63 = vpop.f32.mrb[0].mxu1 }
 0x271   : > { %v473_v0 = vadd.f32 %v1331_v62, %v472_v63  ;;  %v1355_v1 = vpop.f32.mrb[1].mxu1 }
 0x272   : > { %v475_v2 = vpop.f32.mrb[2].mxu1 }
 0x273   : > { %vm478_vm4 = vcmp.gt.f32.partialorder %v473_v0, 20.0  ;;  %v1356_v4 = vpop.f32.mrb[3].mxu1 }
 0x274   : > { %v479_v5 = vsel %vm478_vm4, 0.0, %v473_v0 }
 0x275   : > { %v480_v6 = vmul.f32 1.442695, %v479_v5 }
 0x277   : > { %1479 = vpow2.f32 %v480_v6 }
 0x281   : > { %v1480_v7 = vpop.eup %1479 }
 0x282   : > { %v482_v10 = vadd.f32 1.0, %v1480_v7  ;;  %v485_v14 = vmul.f32 -0.5, %v1480_v7  ;;  %v488_v20 = vand.u32 2147483647, %v1480_v7 }
 0x284   : > { %1481 = vlog2.f32 %v482_v10  ;;  %v486_v18 = vadd.f32 1.0, %v485_v14  ;;  %vm489_vm5 = vcmp.lt.f32.partialorder %v488_v20, 0.0004427343 }
 0x285   : > { %1483 = vpow2.f32 %v494_v13 }
 0x286   : > { %1485 = vpow2.f32 %v496_v15  ;;  %v487_v23 = vmul.f32 %v1480_v7, %v486_v18 }
 0x28e   : > { %v1482_v21 = vpop.eup %1481 }
 0x28f   : > { %v484_v22 = vmul.f32 0.6931472, %v1482_v21  ;;  %v1484_v27 = vpop.eup %1483 }
 0x290   : > { %v1486_v47 = vpop.eup %1485  ;;  %v498_v52 = vsub.f32 0.0, %v1484_v27 }
 0x291   : > { %v490_v25 = vsel %vm489_vm5, %v487_v23, %v484_v22  ;;  %v499_v57 = vsub.f32 0.0, %v1486_v47 }
 0x292   : > { %v491_v26 = vsel %vm478_vm4, %v473_v0, %v490_v25 }
 0x293   : > { %v501_v28 = vcombine.high %v491_v26, %v491_v26  ;;  %v508_v29 = vrot.slane %v491_v26, %v2171_v24  ;;  %v654_v46 = vmul.f32 %v491_v26, %v2103_v3 }
 0x295   : > { %v515_v48 = vrot.slane %v501_v28, %v2171_v24  ;;  %v516_v49 = vcombine.high %v508_v29, %v508_v29  ;;  %v524_v50 = vrot.slane %v508_v29, %v2171_v24  ;;  %v656_v51 = vcombine.high %v654_v46, %v654_v46 }
 0x296   : > { %v663_v8 = vrot.slane %v654_v46, %v2171_v24 }
 0x297   : > { %v517_v53 = vcombine.high %v515_v48, %v515_v48  ;;  %v531_v54 = vrot.slane %v515_v48, %v2171_v24  ;;  %v538_v55 = vrot.slane %v516_v49, %v2171_v24  ;;  %v546_v56 = vcombine.high %v524_v50, %v524_v50 }
 0x298   : > { %v553_v58 = vrot.slane %v524_v50, %v2111_v9  ;;  %v670_v59 = vrot.slane %v656_v51, %v2171_v24  ;;  %v671_v60 = vcombine.high %v663_v8, %v663_v8  ;;  %v679_v5 = vrot.slane %v663_v8, %v2171_v24 }
 0x299   : > { %v545_v61 = vrot.slane %v517_v53, %v2171_v24  ;;  %v547_v62 = vcombine.high %v531_v54, %v531_v54  ;;  %v548_v63 = vcombine.high %v538_v55, %v538_v55  ;;  %v557_v0 = vrot.slane %v538_v55, %v2111_v9 }
 0x29a   : > { %v561_v1 = vrot.slane %v546_v56, %v2111_v9  ;;  %v569_v2 = vrot.slane %v531_v54, %v2111_v9  ;;  %v590_v4 = vmul.f32 %v553_v58, %v498_v52  ;;  %v591_v12 = vmul.f32 %v553_v58, %v499_v57 }
 0x29b   : > { %v549_v6 = vcombine.high %v545_v61, %v545_v61  ;;  %v565_v7 = vrot.slane %v548_v63, %v2111_v9  ;;  %v573_v10 = vrot.slane %v545_v61, %v2111_v9  ;;  %v577_v11 = vrot.slane %v547_v62, %v2111_v9 }
 0x29c   : > { %v592_v13 = vmul.f32 %v557_v0, %v498_v52  ;;  %v593_v14 = vmul.f32 %v557_v0, %v499_v57  ;;  %v594_v15 = vmul.f32 %v561_v1, %v498_v52  ;;  %v595_v17 = vmul.f32 %v561_v1, %v499_v57 }
 0x29d   : > { %v581_v16 = vrot.slane %v549_v6, %v2111_v9  ;;  %v596_v18 = vmul.f32 %v565_v7, %v498_v52  ;;  %v597_v19 = vmul.f32 %v565_v7, %v499_v57  ;;  %v598_v20 = vmul.f32 %v569_v2, %v498_v52 }
 0x29e   : > { %v599_v21 = vmul.f32 %v569_v2, %v499_v57  ;;  %v600_v22 = vmul.f32 %v573_v10, %v498_v52  ;;  %v601_v23 = vmul.f32 %v573_v10, %v499_v57  ;;  %v602_v25 = vmul.f32 %v577_v11, %v498_v52 }
 0x29f   : > { %v603_v26 = vmul.f32 %v577_v11, %v499_v57  ;;  %v604_v27 = vmul.f32 %v581_v16, %v498_v52  ;;  %v606_v28 = vmul.f32 1.442695, %v590_v4  ;;  %v605_v29 = vmul.f32 %v581_v16, %v499_v57 }
 0x2a0   : > { %v608_v46 = vmul.f32 1.442695, %v591_v12  ;;  %v610_v47 = vmul.f32 1.442695, %v592_v13  ;;  %v612_v48 = vmul.f32 1.442695, %v593_v14  ;;  %v672_v51 = vcombine.high %v670_v59, %v670_v59 }
 0x2a1   : > { %1487 = vpow2.f32 %v606_v28  ;;  %v614_v49 = vmul.f32 1.442695, %v594_v15  ;;  %v616_v50 = vmul.f32 1.442695, %v595_v17  ;;  %v618_v8 = vmul.f32 1.442695, %v596_v18 }
 0x2a2   : > { %1489 = vpow2.f32 %v608_v46  ;;  %v620_v53 = vmul.f32 1.442695, %v597_v19  ;;  %v622_v54 = vmul.f32 1.442695, %v598_v20  ;;  %v624_v55 = vmul.f32 1.442695, %v599_v21 }
 0x2a3   : > { %1491 = vpow2.f32 %v610_v47  ;;  %v626_v56 = vmul.f32 1.442695, %v600_v22  ;;  %v628_v58 = vmul.f32 1.442695, %v601_v23  ;;  %v630_v61 = vmul.f32 1.442695, %v602_v25 }
 0x2a4   : > { %1493 = vpow2.f32 %v612_v48  ;;  %v632_v52 = vmul.f32 1.442695, %v603_v26  ;;  %v634_v62 = vmul.f32 1.442695, %v604_v27  ;;  %v686_v57 = vrot.slane %v670_v59, %v2171_v24 }
 0x2a5   : > { %1495 = vpow2.f32 %v614_v49  ;;  %v693_v63 = vrot.slane %v671_v60, %v2171_v24  ;;  %v700_v0 = vrot.slane %v672_v51, %v2171_v24  ;;  %v636_v1 = vmul.f32 1.442695, %v605_v29 }
 0x2a6   : > { %1497 = vpow2.f32 %v616_v50  ;;  %v701_v2 = vcombine.high %v679_v5, %v679_v5  ;;  %v804_v4 = vrot.slane %v679_v5, %v2111_v9  ;;  %v702_v6 = vcombine.high %v686_v57, %v686_v57 }
 0x2a7   : > { %1499 = vpow2.f32 %v618_v8  ;;  %v703_v7 = vcombine.high %v693_v63, %v693_v63  ;;  %v704_v10 = vcombine.high %v700_v0, %v700_v0  ;;  %v808_v11 = vrot.slane %v693_v63, %v2111_v9  ;;  %v963_v8 = vld [vmem:[#allocation4] sm:$0xff] }
 0x2a8   : > { %1501 = vpow2.f32 %v620_v53  ;;  %v812_v12 = vrot.slane %v701_v2, %v2111_v9  ;;  %v820_v59 = vrot.slane %v686_v57, %v2111_v9  ;;  %v824_v24 = vrot.slane %v700_v0, %v2111_v9 }
 0x2a9   : > { %1503 = vpow2.f32 %v622_v54  ;;  %v816_v60 = vrot.slane %v703_v7, %v2111_v9  ;;  %v828_v13 = vrot.slane %v702_v6, %v2111_v9  ;;  %v832_v5 = vrot.slane %v704_v10, %v2111_v9  ;;  %v989_v7 = vld [vmem:[#allocation4 + $0x10] sm:$0xff] }
 0x2aa   : > { %1505 = vpow2.f32 %v624_v55  ;;  %v841_v14 = vmul.f32 %v804_v4, %v2123_v31  ;;  %v842_v15 = vmul.f32 %v804_v4, %v2127_v33  ;;  %v843_v17 = vmul.f32 %v808_v11, %v2121_v30 }
 0x2ab   : > { %v1488_v16 = vpop.eup %1487  ;;  %1507 = vpow2.f32 %v626_v56  ;;  %v844_v18 = vmul.f32 %v808_v11, %v2125_v32  ;;  %v845_v19 = vmul.f32 %v812_v12, %v2131_v35  ;;  %v846_v21 = vmul.f32 %v812_v12, %v2129_v34  ;;  %v964_v56 = vld [vmem:[#allocation4 + $0x8] sm:$0xff] }
 0x2ac   : > { %v1490_v20 = vpop.eup %1489  ;;  %1509 = vpow2.f32 %v628_v58  ;;  %638 = vst.msk [vmem:[#allocation2] sm:$0xff] %vm356_vm0, %v1488_v16  ;;  %v847_v9 = vmul.f32 %v816_v60, %v2135_v37  ;;  %v848_v31 = vmul.f32 %v816_v60, %v2133_v36  ;;  %857 = vst.msk [vmem:[#allocation3] sm:$0xff] %vm356_vm0, %v841_v14  ;;  %v849_v30 = vmul.f32 %v820_v59, %v2139_v39 }
 0x2ad   : > { %858 = vst.msk [vmem:[#allocation3 + $0x8] sm:$0xff] %vm356_vm0, %v842_v15  ;;  %v1492_v33 = vpop.eup %1491  ;;  %1511 = vpow2.f32 %v630_v61  ;;  %639 = vst.msk [vmem:[#allocation2 + $0x8] sm:$0xff] %vm356_vm0, %v1490_v20  ;;  %v850_v32 = vmul.f32 %v820_v59, %v2137_v38  ;;  %v851_v35 = vmul.f32 %v824_v24, %v2143_v41  ;;  %v852_v36 = vmul.f32 %v824_v24, %v2141_v40  ;;  %v990_v59 = vld [vmem:[#allocation4 + $0x18] sm:$0xff] }
 0x2ae   : > { %859 = vst.msk [vmem:[#allocation3 + $0x10] sm:$0xff] %vm356_vm0, %v843_v17  ;;  %860 = vst.msk [vmem:[#allocation3 + $0x18] sm:$0xff] %vm356_vm0, %v844_v18  ;;  %v1494_v34 = vpop.eup %1493  ;;  %1513 = vpow2.f32 %v632_v52  ;;  %v853_v37 = vmul.f32 %v828_v13, %v2147_v43  ;;  %v854_v39 = vmul.f32 %v828_v13, %v2145_v42  ;;  %v855_v41 = vmul.f32 %v832_v5, %v2151_v45  ;;  %v953_v43 = vld [vmem:[#allocation5] sm:$0xff]  ;;  %v954_v45 = vld [vmem:[#allocation5 + $0x8] sm:$0xff] }
 0x2af   : > { %861 = vst.msk [vmem:[#allocation3 + $0x20] sm:$0xff] %vm356_vm0, %v845_v19  ;;  %640 = vst.msk [vmem:[#allocation2 + $0x10] sm:$0xff] %vm356_vm0, %v1492_v33  ;;  %v1496_v38 = vpop.eup %1495  ;;  %1515 = vpow2.f32 %v634_v62  ;;  %v856_v22 = vmul.f32 %v832_v5, %v2149_v44 }
 0x2b0   : > { %862 = vst.msk [vmem:[#allocation3 + $0x28] sm:$0xff] %vm356_vm0, %v846_v21  ;;  %863 = vst.msk [vmem:[#allocation3 + $0x30] sm:$0xff] %vm356_vm0, %v847_v9  ;;  %v1498_v40 = vpop.eup %1497  ;;  %1517 = vpow2.f32 %v636_v1  ;;  %v1014_v21 = vld [vmem:[#allocation4 + $0x20] sm:$0xff] }
 0x2b1   : > { %864 = vst.msk [vmem:[#allocation3 + $0x38] sm:$0xff] %vm356_vm0, %v848_v31  ;;  %641 = vst.msk [vmem:[#allocation2 + $0x18] sm:$0xff] %vm356_vm0, %v1494_v34  ;;  %v1500_v42 = vpop.eup %1499 }
 0x2b2   : > { %865 = vst.msk [vmem:[#allocation3 + $0x40] sm:$0xff] %vm356_vm0, %v849_v30  ;;  %866 = vst.msk [vmem:[#allocation3 + $0x48] sm:$0xff] %vm356_vm0, %v850_v32  ;;  %v1502_v44 = vpop.eup %1501  ;;  %v1015_v30 = vld [vmem:[#allocation4 + $0x28] sm:$0xff] }
 0x2b3   : > { %867 = vst.msk [vmem:[#allocation3 + $0x50] sm:$0xff] %vm356_vm0, %v851_v35  ;;  %642 = vst.msk [vmem:[#allocation2 + $0x20] sm:$0xff] %vm356_vm0, %v1496_v38  ;;  %v1504_v23 = vpop.eup %1503  ;;  %v955_v25 = vld [vmem:[#allocation2] sm:$0xff] }
 0x2b4   : > { %868 = vst.msk [vmem:[#allocation3 + $0x58] sm:$0xff] %vm356_vm0, %v852_v36  ;;  %869 = vst.msk [vmem:[#allocation3 + $0x60] sm:$0xff] %vm356_vm0, %v853_v37  ;;  %v1506_v26 = vpop.eup %1505  ;;  %v956_v27 = vld [vmem:[#allocation2 + $0x8] sm:$0xff]  ;;  %v957_v28 = vmul.f32 %v955_v25, %v953_v43  ;;  %v959_v47 = vld [vmem:[#allocation3] sm:$0xff] }
 0x2b5   : > { %870 = vst.msk [vmem:[#allocation3 + $0x68] sm:$0xff] %vm356_vm0, %v854_v39  ;;  %643 = vst.msk [vmem:[#allocation2 + $0x28] sm:$0xff] %vm356_vm0, %v1498_v40  ;;  %v1508_v29 = vpop.eup %1507  ;;  %v958_v46 = vmul.f32 %v956_v27, %v954_v45  ;;  %v960_v49 = vld [vmem:[#allocation3 + $0x8] sm:$0xff]  ;;  %v984_v0 = vld [vmem:[#allocation3 + $0x10] sm:$0xff] }
 0x2b6   : > { %871 = vst.msk [vmem:[#allocation3 + $0x70] sm:$0xff] %vm356_vm0, %v855_v41  ;;  %872 = vst.msk [vmem:[#allocation3 + $0x78] sm:$0xff] %vm356_vm0, %v856_v22  ;;  %v1510_v48 = vpop.eup %1509  ;;  %v961_v50 = vadd.f32 %v959_v47, %v957_v28  ;;  %v979_v54 = vld [vmem:[#allocation2 + $0x10] sm:$0xff]  ;;  %v985_v4 = vld [vmem:[#allocation3 + $0x18] sm:$0xff] }
 0x2b7   : > { %644 = vst.msk [vmem:[#allocation2 + $0x30] sm:$0xff] %vm356_vm0, %v1500_v42  ;;  %645 = vst.msk [vmem:[#allocation2 + $0x38] sm:$0xff] %vm356_vm0, %v1502_v44  ;;  %v1512_v51 = vpop.eup %1511  ;;  %v962_v53 = vadd.f32 %v960_v49, %v958_v46  ;;  %v1009_v16 = vld [vmem:[#allocation3 + $0x20] sm:$0xff]  ;;  %v1010_v17 = vld [vmem:[#allocation3 + $0x28] sm:$0xff] }
 0x2b8   : > { %646 = vst.msk [vmem:[#allocation2 + $0x40] sm:$0xff] %vm356_vm0, %v1504_v23  ;;  %647 = vst.msk [vmem:[#allocation2 + $0x48] sm:$0xff] %vm356_vm0, %v1506_v26  ;;  %v1514_v55 = vpop.eup %1513  ;;  %v965_v58 = vmul.f32 %v963_v8, %v961_v50  ;;  %v980_v61 = vld [vmem:[#allocation2 + $0x18] sm:$0xff]  ;;  %v981_v52 = vmul.f32 %v979_v54, %v961_v50  ;;  %v1034_v41 = vld [vmem:[#allocation3 + $0x30] sm:$0xff] }
 0x2b9   : > { %648 = vst.msk [vmem:[#allocation2 + $0x50] sm:$0xff] %vm356_vm0, %v1508_v29  ;;  %649 = vst.msk [vmem:[#allocation2 + $0x58] sm:$0xff] %vm356_vm0, %v1510_v48  ;;  %v1516_v62 = vpop.eup %1515  ;;  %v966_v57 = vmul.f32 %v964_v56, %v962_v53  ;;  %v982_v63 = vmul.f32 %v980_v61, %v962_v53  ;;  %v1035_v22 = vld [vmem:[#allocation3 + $0x38] sm:$0xff]  ;;  %v1039_v45 = vld [vmem:[#allocation4 + $0x30] sm:$0xff] }
 0x2ba   : > { %650 = vst.msk [vmem:[#allocation2 + $0x60] sm:$0xff] %vm356_vm0, %v1512_v51  ;;  %651 = vst.msk [vmem:[#allocation2 + $0x68] sm:$0xff] %vm356_vm0, %v1514_v55  ;;  %v1518_v1 = vpop.eup %1517  ;;  %v967_v2 = vsel %vm356_vm0, %v965_v58, 0.0  ;;  %v986_v6 = vadd.f32 %v984_v0, %v981_v52  ;;  %v1004_v12 = vld [vmem:[#allocation2 + $0x20] sm:$0xff]  ;;  %v1040_v27 = vld [vmem:[#allocation4 + $0x38] sm:$0xff] }
 0x2bb   : > { %652 = vst.msk [vmem:[#allocation2 + $0x70] sm:$0xff] %vm356_vm0, %v1516_v62  ;;  %653 = vst.msk [vmem:[#allocation2 + $0x78] sm:$0xff] %vm356_vm0, %v1518_v1  ;;  %v968_v10 = vsel %vm356_vm0, %v966_v57, 0.0  ;;  %v987_v11 = vadd.f32 %v985_v4, %v982_v63  ;;  %v1059_v51 = vld [vmem:[#allocation3 + $0x40] sm:$0xff]  ;;  %v1060_v53 = vld [vmem:[#allocation3 + $0x48] sm:$0xff] }
 0x2bc   : > { %v991_v60 = vmul.f32 %v989_v7, %v986_v6  ;;  %v1005_v24 = vld [vmem:[#allocation2 + $0x28] sm:$0xff]  ;;  %v1006_v13 = vmul.f32 %v1004_v12, %v986_v6  ;;  %v969_v5 = vadd.f32 %v968_v10, %v967_v2  ;;  %v1064_v61 = vld [vmem:[#allocation4 + $0x40] sm:$0xff]  ;;  %v1084_v12 = vld [vmem:[#allocation3 + $0x50] sm:$0xff] }
 0x2bd   : > { %v992_v14 = vmul.f32 %v990_v59, %v987_v11  ;;  %v1007_v15 = vmul.f32 %v1005_v24, %v987_v11  ;;  %v1065_v0 = vld [vmem:[#allocation4 + $0x48] sm:$0xff]  ;;  %v1085_v24 = vld [vmem:[#allocation3 + $0x58] sm:$0xff] }
 0x2be   : > { %v1011_v18 = vadd.f32 %v1009_v16, %v1006_v13  ;;  %v970_v19 = vrot.slane %v969_v5, 4  ;;  %v993_v20 = vsel %vm356_vm0, %v991_v60, 0.0  ;;  %v1029_v31 = vld [vmem:[#allocation2 + $0x30] sm:$0xff]  ;;  %v1030_v35 = vld [vmem:[#allocation2 + $0x38] sm:$0xff] }
 0x2bf   : > { %v1012_v9 = vadd.f32 %v1010_v17, %v1007_v15  ;;  %v994_v33 = vsel %vm356_vm0, %v992_v14, 0.0  ;;  %v1054_v25 = vld [vmem:[#allocation2 + $0x40] sm:$0xff]  ;;  %v1055_v29 = vld [vmem:[#allocation2 + $0x48] sm:$0xff]  ;;  %v1089_v15 = vld [vmem:[#allocation4 + $0x50] sm:$0xff] }
 0x2c0   : > { %v1016_v32 = vmul.f32 %v1014_v21, %v1011_v18  ;;  %v1031_v34 = vmul.f32 %v1029_v31, %v1011_v18  ;;  %v971_v36 = vadd.f32 %v970_v19, %v969_v5  ;;  %v995_v37 = vadd.f32 %v994_v33, %v993_v20  ;;  %v1079_v62 = vld [vmem:[#allocation2 + $0x50] sm:$0xff]  ;;  %v1080_v2 = vld [vmem:[#allocation2 + $0x58] sm:$0xff] }
 0x2c1   : > { %v1017_v39 = vmul.f32 %v1015_v30, %v1012_v9  ;;  %v1032_v38 = vmul.f32 %v1030_v35, %v1012_v9  ;;  %v1104_v17 = vld [vmem:[#allocation2 + $0x60] sm:$0xff]  ;;  %v1090_v21 = vld [vmem:[#allocation4 + $0x58] sm:$0xff]  ;;  %v1105_v31 = vld [vmem:[#allocation2 + $0x68] sm:$0xff] }
 0x2c2   : > { %v1036_v40 = vadd.f32 %v1034_v41, %v1031_v34  ;;  %v972_v42 = vrot.slane %v971_v36, 2  ;;  %v996_v43 = vrot.slane %v995_v37, 4  ;;  %v1018_v44 = vsel %vm356_vm0, %v1016_v32, 0.0 }
 0x2c3   : > { %v1037_v23 = vadd.f32 %v1035_v22, %v1032_v38  ;;  %v1019_v26 = vsel %vm356_vm0, %v1017_v39, 0.0  ;;  %v1110_v38 = vld [vmem:[#allocation3 + $0x68] sm:$0xff] }
 0x2c4   : > { %v1041_v28 = vmul.f32 %v1039_v45, %v1036_v40  ;;  %v1056_v46 = vmul.f32 %v1054_v25, %v1036_v40  ;;  %v973_v47 = vadd.f32 %v972_v42, %v971_v36  ;;  %v997_v48 = vadd.f32 %v996_v43, %v995_v37  ;;  %v1109_v36 = vld [vmem:[#allocation3 + $0x60] sm:$0xff] }
 0x2c5   : > { %v1042_v49 = vmul.f32 %v1040_v27, %v1037_v23  ;;  %v1057_v50 = vmul.f32 %v1055_v29, %v1037_v23  ;;  %v1020_v8 = vadd.f32 %v1019_v26, %v1018_v44  ;;  %v1114_v42 = vld [vmem:[#allocation4 + $0x60] sm:$0xff]  ;;  %v1129_v44 = vld [vmem:[#allocation2 + $0x70] sm:$0xff]  ;;  %v1115_v26 = vld [vmem:[#allocation4 + $0x68] sm:$0xff] }
 0x2c6   : > { %v1061_v54 = vadd.f32 %v1059_v51, %v1056_v46  ;;  %v974_v55 = vrot.slane %v973_v47, 1  ;;  %v998_v56 = vrot.slane %v997_v48, 2  ;;  %v1043_v58 = vsel %vm356_vm0, %v1041_v28, 0.0  ;;  %v1130_v28 = vld [vmem:[#allocation2 + $0x78] sm:$0xff] }
 0x2c7   : > { %v1062_v52 = vadd.f32 %v1060_v53, %v1057_v50  ;;  %v1021_v57 = vrot.slane %v1020_v8, 4  ;;  %v1044_v63 = vsel %vm356_vm0, %v1042_v49, 0.0  ;;  %v1134_v50 = vld [vmem:[#allocation3 + $0x70] sm:$0xff]  ;;  %v1135_v53 = vld [vmem:[#allocation3 + $0x78] sm:$0xff] }
 0x2c8   : > { %v1066_v1 = vmul.f32 %v1064_v61, %v1061_v54  ;;  %v1081_v4 = vmul.f32 %v1079_v62, %v1061_v54  ;;  %v975_v6 = vadd.f32 %v974_v55, %v973_v47  ;;  %v999_v7 = vadd.f32 %v998_v56, %v997_v48  ;;  %v1139_v61 = vld [vmem:[#allocation4 + $0x70] sm:$0xff] }
 0x2c9   : > { %v1067_v10 = vmul.f32 %v1065_v0, %v1062_v52  ;;  %v1082_v11 = vmul.f32 %v1080_v2, %v1062_v52  ;;  %v1022_v59 = vadd.f32 %v1021_v57, %v1020_v8  ;;  %v1045_v60 = vadd.f32 %v1044_v63, %v1043_v58  ;;  %v1140_v63 = vld [vmem:[#allocation4 + $0x78] sm:$0xff] }
 0x2ca   : > { %v1086_v13 = vadd.f32 %v1084_v12, %v1081_v4  ;;  %977 = vst.msk [vmem:[#allocation6] sm:$0x1] %vm976_vm6, %v975_v6  ;;  %v1000_v5 = vrot.slane %v999_v7, 1  ;;  %v1068_v14 = vsel %vm356_vm0, %v1066_v1, 0.0 }
 0x2cb   : > { %v1087_v16 = vadd.f32 %v1085_v24, %v1082_v11  ;;  %v1023_v18 = vrot.slane %v1022_v59, 2  ;;  %v1046_v19 = vrot.slane %v1045_v60, 4  ;;  %v1069_v20 = vsel %vm356_vm0, %v1067_v10, 0.0 }
 0x2cc   : > { %v1091_v9 = vmul.f32 %v1089_v15, %v1086_v13  ;;  %v1106_v33 = vmul.f32 %v1104_v17, %v1086_v13  ;;  %v1001_v30 = vadd.f32 %v1000_v5, %v999_v7  ;;  %v1070_v32 = vadd.f32 %v1069_v20, %v1068_v14 }
 0x2cd   : > { %v1092_v35 = vmul.f32 %v1090_v21, %v1087_v16  ;;  %v1107_v34 = vmul.f32 %v1105_v31, %v1087_v16  ;;  %v1024_v37 = vadd.f32 %v1023_v18, %v1022_v59  ;;  %v1047_v39 = vadd.f32 %v1046_v19, %v1045_v60 }
 0x2ce   : > { %v1111_v41 = vadd.f32 %v1109_v36, %v1106_v33  ;;  %1002 = vst.msk [vmem:[#allocation6 + $0x1] sm:$0x1] %vm976_vm6, %v1001_v30  ;;  %v1071_v22 = vrot.slane %v1070_v32, 4  ;;  %v1093_v40 = vsel %vm356_vm0, %v1091_v9, 0.0 }
 0x2cf   : > { %v1112_v43 = vadd.f32 %v1110_v38, %v1107_v34  ;;  %v1025_v45 = vrot.slane %v1024_v37, 1  ;;  %v1048_v23 = vrot.slane %v1047_v39, 2  ;;  %v1094_v25 = vsel %vm356_vm0, %v1092_v35, 0.0  ;;  %v1333_v35 = vld [vmem:[#allocation16] ss:$0 sm:$0xff] }
 0x2d0   : > { %v1116_v27 = vmul.f32 %v1114_v42, %v1111_v41  ;;  %v1131_v29 = vmul.f32 %v1129_v44, %v1111_v41  ;;  %v1072_v46 = vadd.f32 %v1071_v22, %v1070_v32  ;;  %v1095_v47 = vadd.f32 %v1094_v25, %v1093_v40 }
 0x2d1   : > { %v1117_v48 = vmul.f32 %v1115_v26, %v1112_v43  ;;  %v1132_v49 = vmul.f32 %v1130_v28, %v1112_v43  ;;  %v1026_v51 = vadd.f32 %v1025_v45, %v1024_v37  ;;  %v1049_v8 = vadd.f32 %v1048_v23, %v1047_v39 }
 0x2d2   : > { %v1136_v54 = vadd.f32 %v1134_v50, %v1131_v29  ;;  %v1073_v55 = vrot.slane %v1072_v46, 2  ;;  %v1096_v56 = vrot.slane %v1095_v47, 4  ;;  %v1118_v58 = vsel %vm356_vm0, %v1116_v27, 0.0 }
 0x2d3   : > { %v1137_v52 = vadd.f32 %v1135_v53, %v1132_v49  ;;  %1027 = vst.msk [vmem:[#allocation6 + $0x2] sm:$0x1] %vm976_vm6, %v1026_v51  ;;  %v1050_v62 = vrot.slane %v1049_v8, 1  ;;  %v1119_v57 = vsel %vm356_vm0, %v1117_v48, 0.0  ;;  %v1163_v34 = vmul.f32 %v1333_v35, %v2103_v3 }
 0x2d4   : > { %1153 = vst.msk [vmem:[#allocation5] sm:$0xff] %vm356_vm0, %v1136_v54  ;;  %v1074_v0 = vadd.f32 %v1073_v55, %v1072_v46  ;;  %v1097_v1 = vadd.f32 %v1096_v56, %v1095_v47  ;;  %v1120_v2 = vadd.f32 %v1119_v57, %v1118_v58  ;;  %v1141_v4 = vmul.f32 %v1139_v61, %v1136_v54 }
 0x2d5   : > { %1154 = vst.msk [vmem:[#allocation5 + $0x8] sm:$0xff] %vm356_vm0, %v1137_v52  ;;  %v1051_v6 = vadd.f32 %v1050_v62, %v1049_v8  ;;  %v1142_v7 = vmul.f32 %v1140_v63, %v1137_v52 }
 0x2d6   : > { %v1075_v10 = vrot.slane %v1074_v0, 1  ;;  %v1098_v11 = vrot.slane %v1097_v1, 2  ;;  %v1121_v12 = vrot.slane %v1120_v2, 4  ;;  %v1143_v59 = vsel %vm356_vm0, %v1141_v4, 0.0 }
 0x2d7   : > { %1052 = vst.msk [vmem:[#allocation6 + $0x3] sm:$0x1] %vm976_vm6, %v1051_v6  ;;  %v1144_v60 = vsel %vm356_vm0, %v1142_v7, 0.0 }
 0x2d8   : > { %v1076_v24 = vadd.f32 %v1075_v10, %v1074_v0  ;;  %v1099_v13 = vadd.f32 %v1098_v11, %v1097_v1  ;;  %v1122_v5 = vadd.f32 %v1121_v12, %v1120_v2  ;;  %v1145_v14 = vadd.f32 %v1144_v60, %v1143_v59 }
 0x2da   : > { %1077 = vst.msk [vmem:[#allocation6 + $0x4] sm:$0x1] %vm976_vm6, %v1076_v24  ;;  %v1100_v15 = vrot.slane %v1099_v13, 1  ;;  %v1123_v16 = vrot.slane %v1122_v5, 2  ;;  %v1146_v17 = vrot.slane %v1145_v14, 4 }
 0x2dc   : > { %v1101_v18 = vadd.f32 %v1100_v15, %v1099_v13  ;;  %v1124_v19 = vadd.f32 %v1123_v16, %v1122_v5  ;;  %v1147_v20 = vadd.f32 %v1146_v17, %v1145_v14 }
 0x2de   : > { %1102 = vst.msk [vmem:[#allocation6 + $0x5] sm:$0x1] %vm976_vm6, %v1101_v18  ;;  %v1125_v21 = vrot.slane %v1124_v19, 1  ;;  %v1148_v9 = vrot.slane %v1147_v20, 2 }
 0x2e0   : > { %v1126_v31 = vadd.f32 %v1125_v21, %v1124_v19  ;;  %v1149_v33 = vadd.f32 %v1148_v9, %v1147_v20 }
 0x2e2   : > { %1127 = vst.msk [vmem:[#allocation6 + $0x6] sm:$0x1] %vm976_vm6, %v1126_v31  ;;  %v1150_v30 = vrot.slane %v1149_v33, 1 }
 0x2e4   : > { %v1151_v32 = vadd.f32 %v1150_v30, %v1149_v33 }
 0x2e6   : > { %1152 = vst.msk [vmem:[#allocation6 + $0x7] sm:$0x1] %vm976_vm6, %v1151_v32 }
 0x2ed   : > { %v1155_v36 = vld [vmem:[#allocation6] sm:$0xff] }
 0x2ee   : > { %v1164_v37 = vadd.f32 %v1163_v34, %v1155_v36 }
 0x2f0   : > { %1165 = vst.msk [vmem:[%s350_s29] sm:$0xff] %vm356_vm0, %v1164_v37 }
 0x2f1   : > { %1702 = shalt.err (!%p1699_p8)
}
 0x2f2   : > { %s1703_s27 = scalar_lea.hbm %s2284_s8, 128  ;;  %s1707_s9 = scalar_lea.hbm %s2340_s6, 256 }
 0x2f3   : > { %p1704_p1 = scmp.ne.s32.totalorder %s2284_s8, %s1703_s27  ;;  %p1708_p0 = scmp.lt.u32.totalorder %s2284_s8, %s2340_s6 }
 0x2f4   : > { %p1709_p3 = scmp.lt.u32.totalorder %s1707_s9, %s1703_s27  ;;  %p1711_p6 = scmp.lt.u32.totalorder %s1703_s27, %s2284_s8 }
 0x2f5   : > { %p1705_p12 = pnand %p1704_p1, %p2361_p5 }
 0x2f6   : > { %p1710_p7 = por %p1709_p3, %p1708_p0 }
 0x2f7   : > { %p1706_p13 = pneg %p1705_p12 }
 0x2f8   : > { %p1712_p10 = por %p1711_p6, %p1710_p7 }
 0x2fa   : > { %p1713_p11 = pnand %p1712_p10, %p1706_p13 }
 0x2fc   : > { %1716 = shalt.err (!%p1713_p11)
}
 0x2fd   : > { %1379 = dma.vmem_to_hbm [thread:$0]  (%p2361_p5), %s2286_s11, 128, %s2284_s8, %s1167_s14  }
 0x2fe PF: > { %s1193_s29 = sand.u32 1, %s1763_s21   ;;  %p2362_p2 = scmp.ne.s32.totalorder %s2357_s17, 0 }
 0x2ff   : > { %p2363_p4 = scmp.ge.s32.totalorder %s1783_s26, 2  ;;  %s1194_s10 = scalar_lea.sflag [#allocation9], %s1193_s29 }
 0x301   : > { %p1402_p9 = pnand %p2363_p4, %p2362_p2 }
 0x303   : > { %1758 = dma.done.wait (!%p1402_p9), %s1194_s10, 128  }
 0x304   : > { %1760 = vsyncadd (!%p1402_p9), %s1194_s10, 4294967168  ;;  %s25_s26 = sadd.s32 1, %s1783_s26   ;;  %s2364_s21 = smov %s1767_s22 }
 0x305   : > { %p22_p8 = scmp.ge.s32.totalorder %s25_s26, 4   ;;  %s2365_s22 = smov %s1771_s23 }
 0x306   : > { %s2366_s23 = smov %s2030_s16  ;;  %s2367_s24 = smov %s1779_s25 }
 0x307   : > { %s2368_s25 = smov %s2370_s7  ;;  %24 = sbr.rel (!%p22_p8) target bundleno = 11 (0xb), region = 134 }
 0x30e   :  { %1199 = vsyncpa [#allocation8], 1 }
 0x30f   :  { %1201 = vsyncpa [#allocation8 + $0x1], 1 }
 0x310   :  { %1202 = vsyncpa [#allocation11], 1 }
 0x311   :  { %1203 = vsyncpa [#allocation14], 1 }
 0x312   :  { %1204 = vsyncpa [#allocation17], 1 }
 0x313   :  { %1205 = vsyncpa [#allocation9], 1 }
 0x314   :  { %1207 = vsyncpa [#allocation9 + $0x1], 1 }

</bundles_post_ra>
